<compile_context>
chip_gen: v6e
topology: v6e:2x2x1
jax: 0.10.0
libtpu: 0.0.40
codegen_flags: <defaults>
</compile_context>

<pallas_src>
import jax
import jax.numpy as jnp
from jax import lax
from jax.experimental import pallas as pl
from jax.experimental.pallas import tpu as pltpu

LN_EPS = 1e-5
_MiB = 1024 * 1024


def _round_up(x, m):
    return (x + m - 1) // m * m


def _make_kernel(n_tokens, tn, need_token_mask):
    inv_n = 1.0 / n_tokens

    def kernel(x_ref, w1_ref, b1_ref, g_ref, beta_ref, w2_ref, b2_ref,
               o_ref, pooled_acc):
        n_step = pl.program_id(1)

        @pl.when(n_step == 0)
        def _():
            pooled_acc[...] = jnp.zeros_like(pooled_acc)

        # Reduce('b n e -> b e', mean): accumulate the token sum in f32.
        # x is NOT padded in HBM; when N % tn != 0 the last token block reads
        # past the array and that region is unspecified, so mask with a select
        # (never multiply by 0: NaN * 0 = NaN).
        xv = x_ref[...]
        if need_token_mask:
            tok = lax.broadcasted_iota(jnp.int32, (1, tn, xv.shape[-1]), 1)
            tok = tok + n_step * tn
            xv = jnp.where(tok < n_tokens, xv, jnp.zeros((), xv.dtype))
        pooled_acc[...] += jnp.sum(xv, axis=1, dtype=jnp.float32)
        # TODO(synk): if a v7x bundle dump shows this cross-sublane reduce on the
        # critical path with bf16 x, move the pooling onto the MXU (dot against ones).

        @pl.when(n_step == pl.num_programs(1) - 1)
        def _():
            pooled = pooled_acc[...] * inv_n                      # (tb, E) mean, f32

            # Linear(E, E): MXU operands in the weight dtype, f32 accumulation.
            h = jnp.dot(pooled.astype(w1_ref.dtype), w1_ref[...],
                        preferred_element_type=jnp.float32)
            h = h + b1_ref[...]                                   # (tb, E) + (1, E)

            # LayerNorm(E) in f32 (biased variance, as in PyTorch).
            mu = jnp.mean(h, axis=-1, keepdims=True)
            var = jnp.mean((h - mu) * (h - mu), axis=-1, keepdims=True)
            h = (h - mu) * lax.rsqrt(var + LN_EPS)
            h = h * g_ref[...] + beta_ref[...]

            # ReLU
            h = jnp.maximum(h, 0.0)

            # Linear(E, C_padded), lane-dense store.
            out = jnp.dot(h.astype(w2_ref.dtype), w2_ref[...],
                          preferred_element_type=jnp.float32)
            o_ref[...] = (out + b2_ref[...]).astype(o_ref.dtype)

    return kernel


def classification_head(x, w1, b1, gamma, beta, w2, b2, *,
                        tb=128, tn=None, compute_dtype=jnp.bfloat16):
    """mean-pool('b n e -> b e') -> Linear(E,E) -> LayerNorm -> ReLU -> Linear(E,C).

    x: (B, N, E), f32 or bf16. If upstream activations are bf16, pass them
       through unchanged (do NOT cast f32->bf16 here -- that costs a full HBM
       pass); the token reduction always accumulates in f32.
    w1:(E,E) b1:(1,E) gamma/beta:(1,E) w2:(E,C) b2:(1,C)  -- (in, out) layout.

    tb: batch tile (multiple of 8). Default 128; do NOT raise it on v7x
        (64 MiB physical VMEM) -- larger tiles only belong on v5e/v6e.
    tn: token tile; None -> adaptive (largest tile fitting the VMEM budget,
        so short sequences run a single token step per batch tile).
    compute_dtype: MXU operand dtype (f32 accumulation in-kernel). Pass
        jnp.float32 for strict parity with an f32 PyTorch head.

    x is never copied/padded in HBM: the token remainder is masked in-kernel,
    the batch remainder is a partial last block sliced off the output.
    Note: N is baked into the kernel (mean divisor + mask bound), so each
    distinct N triggers a recompile.
    """
    B, N, E = x.shape
    C = w2.shape[1]
    assert E % 128 == 0, "emb_size must be a multiple of 128 (lane width)"

    x_item = x.dtype.itemsize
    sub = 16 if x_item < 4 else 8          # bf16 packs 2 rows per sublane

    # Lane-dense output stores: pad the class dim to a multiple of 128
    # (weights/bias only -- tiny, one-off; x itself is never padded).
    Cp = _round_up(C, 128)
    if Cp != C:
        w2 = jnp.pad(w2, ((0, 0), (0, Cp - C)))
        b2 = jnp.pad(b2, ((0, 0), (0, Cp - C)))

    # ---- batch tile: multiple of 8; guarantee >=2 batch blocks when possible
    # so dimension_semantics=("parallel", ...) can shard across both v7x TCs.
    tb = max(8, min(_round_up(tb, 8), _round_up(B, 8)))
    while pl.cdiv(B, tb) < 2 and tb > 8:
        tb = max(8, _round_up(tb // 2, 8))

    # ---- VMEM budget (generation-aware): size tiles against the chip's real
    # capacity minus headroom for compiler-internal scratch.
    try:
        vmem_cap = int(pltpu.get_tpu_info().vmem_capacity_bytes)
    except Exception:
        vmem_cap = 64 * _MiB               # conservative fallback = v7x physical
    cd_item = jnp.dtype(compute_dtype).itemsize
    w_bytes = 2 * ((E * E + E * Cp) * cd_item + (3 * E + Cp) * 4)  # conservative (2x)
    out_bytes = 2 * tb * Cp * 4
    acc_bytes = tb * E * 4
    headroom = 12 * _MiB
    raw_budget = vmem_cap - headroom - w_bytes - out_bytes - acc_bytes

    # Shrink tb (not below 8) only if even a minimal token tile would not fit
    # (very large E on v7x's 64 MiB VMEM).
    while tb > 8 and 2 * tb * sub * E * x_item > raw_budget:
        tb = max(8, _round_up(tb // 2, 8))
    Bp = _round_up(B, tb)                  # output rows (allocation only)

    # ---- token tile: adaptive / clamped to the double-buffered x budget.
    budget_tn = max(sub, (max(raw_budget, 0) // (2 * tb * E * x_item)) // sub * sub)
    if tn is None:
        tn = budget_tn
    else:
        tn = min(_round_up(int(tn), sub), budget_tn)
    tn = max(sub, min(tn, _round_up(N, sub)))

    need_token_mask = (N % tn) != 0
    grid = (Bp // tb, pl.cdiv(N, tn))

    # Final VMEM limit: x tile bytes already include the double buffer.
    x_bytes = 2 * tb * tn * E * x_item
    needed = x_bytes + w_bytes + 2 * tb * Cp * 4 + tb * E * 4
    vmem_limit = int(min(vmem_cap - 8 * _MiB, max(needed + 4 * _MiB, 32 * _MiB)))

    # MXU operands in compute_dtype (f32 accumulation in-kernel); biases / LN
    # params stay f32.
    w1c = w1.astype(compute_dtype)
    w2c = w2.astype(compute_dtype)

    kernel = _make_kernel(N, tn, need_token_mask)

    def build(single_buffer_weights):
        # Constant-index-map operands never need double buffering: Buffered(1)
        # halves their resident VMEM (matters for large E on v7x).
        wkw = dict(pipeline_mode=pl.Buffered(1)) if single_buffer_weights else {}
        return pl.pallas_call(
            kernel,
            out_shape=jax.ShapeDtypeStruct((Bp, Cp), jnp.float32),
            grid_spec=pltpu.PrefetchScalarGridSpec(
                num_scalar_prefetch=0,
                grid=grid,
                in_specs=[
                    pl.BlockSpec((tb, tn, E), lambda i, n: (i, n, 0)),      # x stream
                    pl.BlockSpec((E, E), lambda i, n: (0, 0), **wkw),       # W1
                    pl.BlockSpec((1, E), lambda i, n: (0, 0), **wkw),       # b1
                    pl.BlockSpec((1, E), lambda i, n: (0, 0), **wkw),       # LN gamma
                    pl.BlockSpec((1, E), lambda i, n: (0, 0), **wkw),       # LN beta
                    pl.BlockSpec((E, Cp), lambda i, n: (0, 0), **wkw),      # W2
                    pl.BlockSpec((1, Cp), lambda i, n: (0, 0), **wkw),      # b2
                ],
                out_specs=pl.BlockSpec((tb, Cp), lambda i, n: (i, 0)),      # resident over n
                scratch_shapes=[pltpu.VMEM((tb, E), jnp.float32)],          # pooled-sum acc
            ),
            compiler_params=pltpu.CompilerParams(
                dimension_semantics=("parallel", "arbitrary"),
                vmem_limit_bytes=vmem_limit),
        )

    args = (x, w1c, b1, gamma, beta, w2c, b2)
    try:
        out = build(True)(*args)
    except Exception:
        # Fall back to default (double-buffered) weight operands if this JAX
        # version rejects pipeline_mode=pl.Buffered(1).
        out = build(False)(*args)

    return out[:B, :C]


def reference(x, w1, b1, gamma, beta, w2, b2):
    pooled = jnp.mean(x.astype(jnp.float32), axis=1)
    h = pooled @ w1 + b1[0]
    mu = jnp.mean(h, axis=-1, keepdims=True)
    var = jnp.mean((h - mu) ** 2, axis=-1, keepdims=True)
    h = (h - mu) / jnp.sqrt(var + LN_EPS)
    h = h * gamma[0] + beta[0]
    h = jnp.maximum(h, 0.0)
    return h @ w2 + b2[0]


if __name__ == "__main__":
    E, C = 256, 200

    key = jax.random.PRNGKey(0)
    kx, kw1, kb1, kw2, kb2, kx2 = jax.random.split(key, 6)

    # Deterministic synthetic params (shapes from nn.Linear / nn.LayerNorm).
    w1 = jax.random.normal(kw1, (E, E), dtype=jnp.float32) * (1.0 / jnp.sqrt(E))
    b1 = jax.random.normal(kb1, (1, E), dtype=jnp.float32) * 0.01
    gamma = jnp.ones((1, E), dtype=jnp.float32)
    beta = jnp.zeros((1, E), dtype=jnp.float32)
    w2 = jax.random.normal(kw2, (E, C), dtype=jnp.float32) * (1.0 / jnp.sqrt(E))
    b2 = jax.random.normal(kb2, (1, C), dtype=jnp.float32) * 0.01

    # ---- test 1: f32 activations, explicit small token tile.
    # B not a multiple of 8, N not a multiple of tn, C not a multiple of 128:
    # exercises the partial batch block, the in-kernel token mask, multi-step
    # pooled accumulation and the padded-class output slice (no jnp.pad of x).
    B, N = 6, 40
    x = jax.random.normal(kx, (B, N, E), dtype=jnp.float32)
    out = jax.block_until_ready(
        classification_head(x, w1, b1, gamma, beta, w2, b2, tn=16))
    ref = reference(x, w1, b1, gamma, beta, w2, b2)
    assert out.shape == (B, C)
    err = float(jnp.max(jnp.abs(out - ref)))
    assert jnp.allclose(out, ref, atol=5e-2, rtol=5e-2), f"f32 max abs err {err}"

    # ---- test 2: bf16 activations streamed straight through (no wrapper cast),
    # adaptive token tile (single token step), >=2 batch blocks (megacore path).
    B2, N2 = 12, 64
    x2 = jax.random.normal(kx2, (B2, N2, E), dtype=jnp.float32).astype(jnp.bfloat16)
    out2 = jax.block_until_ready(
        classification_head(x2, w1, b1, gamma, beta, w2, b2))
    ref2 = reference(x2, w1, b1, gamma, beta, w2, b2)
    assert out2.shape == (B2, C)
    err2 = float(jnp.max(jnp.abs(out2 - ref2)))
    assert jnp.allclose(out2, ref2, atol=1e-1, rtol=1e-1), f"bf16 max abs err {err2}"

    print("KERNEL_OK")
</pallas_src>

<mosaic_0001>
module attributes {stable_mosaic.version = 11 : i64} {
  func.func @kernel(%arg0: i32, %arg1: i32, %arg2: memref<8x16x256xf32, #tpu.memory_space<vmem>>, %arg3: memref<256x256xbf16, #tpu.memory_space<vmem>>, %arg4: memref<1x256xf32, #tpu.memory_space<vmem>>, %arg5: memref<1x256xf32, #tpu.memory_space<vmem>>, %arg6: memref<1x256xf32, #tpu.memory_space<vmem>>, %arg7: memref<256x256xbf16, #tpu.memory_space<vmem>>, %arg8: memref<1x256xf32, #tpu.memory_space<vmem>>, %arg9: memref<8x256xf32, #tpu.memory_space<vmem>>, %arg10: memref<8x256xf32, #tpu.memory_space<vmem>>) attributes {dimension_semantics = [#tpu.dimension_semantics<parallel>, #tpu.dimension_semantics<arbitrary>], iteration_bounds = array<i64: 1, 3>, scalar_prefetch = 0 : i64, scratch_operands = 1 : i64, tpu.core_type = #tpu.core_type<tc>, window_params = [{transform_indices = @transform_0, window_bounds = array<i64: 8, 16, 256>}, {pipeline_mode = #tpu.pipeline_mode<synchronous>, transform_indices = @transform_1, window_bounds = array<i64: 256, 256>}, {pipeline_mode = #tpu.pipeline_mode<synchronous>, transform_indices = @transform_2, window_bounds = array<i64: 1, 256>}, {pipeline_mode = #tpu.pipeline_mode<synchronous>, transform_indices = @transform_3, window_bounds = array<i64: 1, 256>}, {pipeline_mode = #tpu.pipeline_mode<synchronous>, transform_indices = @transform_4, window_bounds = array<i64: 1, 256>}, {pipeline_mode = #tpu.pipeline_mode<synchronous>, transform_indices = @transform_5, window_bounds = array<i64: 256, 256>}, {pipeline_mode = #tpu.pipeline_mode<synchronous>, transform_indices = @transform_6, window_bounds = array<i64: 1, 256>}, {transform_indices = @transform_7, window_bounds = array<i64: 8, 256>}]} {
    %c0_i32 = arith.constant 0 : i32
    %0 = arith.cmpi eq, %arg1, %c0_i32 : i32
    %1 = arith.extui %0 : i1 to i32
    %c0_i32_0 = arith.constant 0 : i32
    %2 = arith.cmpi ne, %1, %c0_i32_0 : i32
    scf.if %2 {
      %cst_9 = arith.constant 0.000000e+00 : f32
      %21 = vector.broadcast %cst_9 : f32 to vector<8x256xf32>
      %c0_10 = arith.constant 0 : index
      %c0_11 = arith.constant 0 : index
      %22 = vector.load %arg10[%c0_10, %c0_11] : memref<8x256xf32, #tpu.memory_space<vmem>>, vector<8x256xf32>
      tpu.vector_store %arg10[%c0_10, %c0_11], %21 {strides = array<i32>} : memref<8x256xf32, #tpu.memory_space<vmem>>, vector<8x256xf32>,
    } else {
    }
    %c0 = arith.constant 0 : index
    %c0_1 = arith.constant 0 : index
    %c0_2 = arith.constant 0 : index
    %3 = vector.load %arg2[%c0, %c0_1, %c0_2] : memref<8x16x256xf32, #tpu.memory_space<vmem>>, vector<8x16x256xf32>
    %4 = tpu.iota {dimensions = array<i32: 1>} : vector<1x16x256xi32>
    %c16_i32 = arith.constant 16 : i32
    %5 = arith.muli %arg1, %c16_i32 : i32
    %6 = vector.broadcast %5 : i32 to vector<1x16x256xi32>
    %7 = arith.addi %4, %6 : vector<1x16x256xi32>
    %c40_i32 = arith.constant 40 : i32
    %8 = vector.broadcast %c40_i32 : i32 to vector<1x16x256xi32>
    %9 = arith.cmpi slt, %7, %8 : vector<1x16x256xi32>
    %cst = arith.constant 0.000000e+00 : f32
    %10 = vector.shape_cast %9 : vector<1x16x256xi1> to vector<1x16x256xi1>
    %11 = vector.broadcast %10 : vector<1x16x256xi1> to vector<8x16x256xi1>
    %12 = vector.broadcast %cst : f32 to vector<8x16x256xf32>
    %13 = arith.select %11, %3, %12 : vector<8x16x256xi1>, vector<8x16x256xf32>
    %c0_3 = arith.constant 0 : index
    %c0_4 = arith.constant 0 : index
    %14 = vector.load %arg10[%c0_3, %c0_4] : memref<8x256xf32, #tpu.memory_space<vmem>>, vector<8x256xf32>
    %cst_5 = arith.constant dense<0.000000e+00> : vector<8x256xf32>
    %15 = vector.multi_reduction <add>, %13, %cst_5 [1] : vector<8x16x256xf32> to vector<8x256xf32>
    %16 = arith.addf %14, %15 : vector<8x256xf32>
    %c0_6 = arith.constant 0 : index
    %c0_7 = arith.constant 0 : index
    %17 = vector.load %arg10[%c0_6, %c0_7] : memref<8x256xf32, #tpu.memory_space<vmem>>, vector<8x256xf32>
    tpu.vector_store %arg10[%c0_6, %c0_7], %16 {strides = array<i32>} : memref<8x256xf32, #tpu.memory_space<vmem>>, vector<8x256xf32>,
    %c2_i32 = arith.constant 2 : i32
    %18 = arith.cmpi eq, %arg1, %c2_i32 : i32
    %19 = arith.extui %18 : i1 to i32
    %c0_i32_8 = arith.constant 0 : i32
    %20 = arith.cmpi ne, %19, %c0_i32_8 : i32
    scf.if %20 {
      %c0_9 = arith.constant 0 : index
      %c0_10 = arith.constant 0 : index
      %21 = vector.load %arg10[%c0_9, %c0_10] : memref<8x256xf32, #tpu.memory_space<vmem>>, vector<8x256xf32>
      %cst_11 = arith.constant 2.500000e-02 : f32
      %22 = vector.broadcast %cst_11 : f32 to vector<8x256xf32>
      %23 = arith.mulf %21, %22 : vector<8x256xf32>
      %24 = arith.truncf %23 : vector<8x256xf32> to vector<8x256xbf16>
      %c0_12 = arith.constant 0 : index
      %c0_13 = arith.constant 0 : index
      %25 = vector.load %arg3[%c0_12, %c0_13] : memref<256x256xbf16, #tpu.memory_space<vmem>>, vector<256x256xbf16>
      %cst_14 = arith.constant dense<0.000000e+00> : vector<8x256xf32>
      %26 = tpu.matmul %24, %25, %cst_14 {dimension_numbers = #tpu.dot_dimension_numbers<[1], [0], [0], [1], [0, 0, 1, 1], [], []>} : vector<8x256xbf16>, vector<256x256xbf16>, vector<8x256xf32> -> vector<8x256xf32>
      %c0_15 = arith.constant 0 : index
      %c0_16 = arith.constant 0 : index
      %27 = vector.load %arg4[%c0_15, %c0_16] : memref<1x256xf32, #tpu.memory_space<vmem>>, vector<1x256xf32>
      %28 = vector.broadcast %27 : vector<1x256xf32> to vector<8x256xf32>
      %29 = arith.addf %26, %28 : vector<8x256xf32>
      %cst_17 = arith.constant dense<0.000000e+00> : vector<8xf32>
      %30 = vector.multi_reduction <add>, %29, %cst_17 [1] : vector<8x256xf32> to vector<8xf32>
      %31 = vector.shape_cast %30 : vector<8xf32> to vector<8x1xf32>
      %cst_18 = arith.constant 2.560000e+02 : f32
      %32 = vector.broadcast %cst_18 : f32 to vector<8x1xf32>
      %33 = arith.divf %31, %32 : vector<8x1xf32>
      %34 = vector.broadcast %33 : vector<8x1xf32> to vector<8x256xf32>
      %35 = arith.subf %29, %34 : vector<8x256xf32>
      %36 = vector.broadcast %33 : vector<8x1xf32> to vector<8x256xf32>
      %37 = arith.subf %29, %36 : vector<8x256xf32>
      %38 = arith.mulf %35, %37 : vector<8x256xf32>
      %cst_19 = arith.constant dense<0.000000e+00> : vector<8xf32>
      %39 = vector.multi_reduction <add>, %38, %cst_19 [1] : vector<8x256xf32> to vector<8xf32>
      %40 = vector.shape_cast %39 : vector<8xf32> to vector<8x1xf32>
      %cst_20 = arith.constant 2.560000e+02 : f32
      %41 = vector.broadcast %cst_20 : f32 to vector<8x1xf32>
      %42 = arith.divf %40, %41 : vector<8x1xf32>
      %43 = vector.broadcast %33 : vector<8x1xf32> to vector<8x256xf32>
      %44 = arith.subf %29, %43 : vector<8x256xf32>
      %cst_21 = arith.constant 9.99999974E-6 : f32
      %45 = vector.broadcast %cst_21 : f32 to vector<8x1xf32>
      %46 = arith.addf %42, %45 : vector<8x1xf32>
      %47 = math.rsqrt %46 : vector<8x1xf32>
      %48 = vector.broadcast %47 : vector<8x1xf32> to vector<8x256xf32>
      %49 = arith.mulf %44, %48 : vector<8x256xf32>
      %c0_22 = arith.constant 0 : index
      %c0_23 = arith.constant 0 : index
      %50 = vector.load %arg5[%c0_22, %c0_23] : memref<1x256xf32, #tpu.memory_space<vmem>>, vector<1x256xf32>
      %51 = vector.broadcast %50 : vector<1x256xf32> to vector<8x256xf32>
      %52 = arith.mulf %49, %51 : vector<8x256xf32>
      %c0_24 = arith.constant 0 : index
      %c0_25 = arith.constant 0 : index
      %53 = vector.load %arg6[%c0_24, %c0_25] : memref<1x256xf32, #tpu.memory_space<vmem>>, vector<1x256xf32>
      %54 = vector.broadcast %53 : vector<1x256xf32> to vector<8x256xf32>
      %55 = arith.addf %52, %54 : vector<8x256xf32>
      %cst_26 = arith.constant 0.000000e+00 : f32
      %56 = vector.broadcast %cst_26 : f32 to vector<8x256xf32>
      %57 = arith.maximumf %55, %56 : vector<8x256xf32>
      %58 = arith.truncf %57 : vector<8x256xf32> to vector<8x256xbf16>
      %c0_27 = arith.constant 0 : index
      %c0_28 = arith.constant 0 : index
      %59 = vector.load %arg7[%c0_27, %c0_28] : memref<256x256xbf16, #tpu.memory_space<vmem>>, vector<256x256xbf16>
      %cst_29 = arith.constant dense<0.000000e+00> : vector<8x256xf32>
      %60 = tpu.matmul %58, %59, %cst_29 {dimension_numbers = #tpu.dot_dimension_numbers<[1], [0], [0], [1], [0, 0, 1, 1], [], []>} : vector<8x256xbf16>, vector<256x256xbf16>, vector<8x256xf32> -> vector<8x256xf32>
      %c0_30 = arith.constant 0 : index
      %c0_31 = arith.constant 0 : index
      %61 = vector.load %arg8[%c0_30, %c0_31] : memref<1x256xf32, #tpu.memory_space<vmem>>, vector<1x256xf32>
      %62 = vector.broadcast %61 : vector<1x256xf32> to vector<8x256xf32>
      %63 = arith.addf %60, %62 : vector<8x256xf32>
      %c0_32 = arith.constant 0 : index
      %c0_33 = arith.constant 0 : index
      %64 = vector.load %arg9[%c0_32, %c0_33] : memref<8x256xf32, #tpu.memory_space<vmem>>, vector<8x256xf32>
      tpu.vector_store %arg9[%c0_32, %c0_33], %63 {strides = array<i32>} : memref<8x256xf32, #tpu.memory_space<vmem>>, vector<8x256xf32>,
    } else {
    }
    return
  }
  func.func @transform_0(%arg0: i32, %arg1: i32) -> (i32, i32, i32) {
    %c0_i32 = arith.constant 0 : i32
    %c0_i32_0 = arith.constant 0 : i32
    return %arg0, %arg1, %c0_i32 : i32, i32, i32
  }
  func.func @transform_1(%arg0: i32, %arg1: i32) -> (i32, i32) {
    %c0_i32 = arith.constant 0 : i32
    %c0_i32_0 = arith.constant 0 : i32
    %c0_i32_1 = arith.constant 0 : i32
    return %c0_i32, %c0_i32_0 : i32, i32
  }
  func.func @transform_2(%arg0: i32, %arg1: i32) -> (i32, i32) {
    %c0_i32 = arith.constant 0 : i32
    %c0_i32_0 = arith.constant 0 : i32
    %c0_i32_1 = arith.constant 0 : i32
    return %c0_i32, %c0_i32_0 : i32, i32
  }
  func.func @transform_3(%arg0: i32, %arg1: i32) -> (i32, i32) {
    %c0_i32 = arith.constant 0 : i32
    %c0_i32_0 = arith.constant 0 : i32
    %c0_i32_1 = arith.constant 0 : i32
    return %c0_i32, %c0_i32_0 : i32, i32
  }
  func.func @transform_4(%arg0: i32, %arg1: i32) -> (i32, i32) {
    %c0_i32 = arith.constant 0 : i32
    %c0_i32_0 = arith.constant 0 : i32
    %c0_i32_1 = arith.constant 0 : i32
    return %c0_i32, %c0_i32_0 : i32, i32
  }
  func.func @transform_5(%arg0: i32, %arg1: i32) -> (i32, i32) {
    %c0_i32 = arith.constant 0 : i32
    %c0_i32_0 = arith.constant 0 : i32
    %c0_i32_1 = arith.constant 0 : i32
    return %c0_i32, %c0_i32_0 : i32, i32
  }
  func.func @transform_6(%arg0: i32, %arg1: i32) -> (i32, i32) {
    %c0_i32 = arith.constant 0 : i32
    %c0_i32_0 = arith.constant 0 : i32
    %c0_i32_1 = arith.constant 0 : i32
    return %c0_i32, %c0_i32_0 : i32, i32
  }
  func.func @transform_7(%arg0: i32, %arg1: i32) -> (i32, i32) {
    %c0_i32 = arith.constant 0 : i32
    %c0_i32_0 = arith.constant 0 : i32
    return %arg0, %c0_i32 : i32, i32
  }
}

module attributes {stable_mosaic.version = 11 : i64} {
  func.func @kernel(%arg0: i32, %arg1: i32, %arg2: memref<8x16x256xf32, #tpu.memory_space<vmem>>, %arg3: memref<256x256xbf16, #tpu.memory_space<vmem>>, %arg4: memref<1x256xf32, #tpu.memory_space<vmem>>, %arg5: memref<1x256xf32, #tpu.memory_space<vmem>>, %arg6: memref<1x256xf32, #tpu.memory_space<vmem>>, %arg7: memref<256x256xbf16, #tpu.memory_space<vmem>>, %arg8: memref<1x256xf32, #tpu.memory_space<vmem>>, %arg9: memref<8x256xf32, #tpu.memory_space<vmem>>, %arg10: memref<8x256xf32, #tpu.memory_space<vmem>>) attributes {dimension_semantics = [#tpu.dimension_semantics<parallel>, #tpu.dimension_semantics<arbitrary>], iteration_bounds = array<i64: 1, 3>, scalar_prefetch = 0 : i64, scratch_operands = 1 : i64, tpu.core_type = #tpu.core_type<tc>, window_params = [{transform_indices = @transform_0, window_bounds = array<i64: 8, 16, 256>}, {pipeline_mode = #tpu.pipeline_mode<synchronous>, transform_indices = @transform_1, window_bounds = array<i64: 256, 256>}, {pipeline_mode = #tpu.pipeline_mode<synchronous>, transform_indices = @transform_2, window_bounds = array<i64: 1, 256>}, {pipeline_mode = #tpu.pipeline_mode<synchronous>, transform_indices = @transform_3, window_bounds = array<i64: 1, 256>}, {pipeline_mode = #tpu.pipeline_mode<synchronous>, transform_indices = @transform_4, window_bounds = array<i64: 1, 256>}, {pipeline_mode = #tpu.pipeline_mode<synchronous>, transform_indices = @transform_5, window_bounds = array<i64: 256, 256>}, {pipeline_mode = #tpu.pipeline_mode<synchronous>, transform_indices = @transform_6, window_bounds = array<i64: 1, 256>}, {transform_indices = @transform_7, window_bounds = array<i64: 8, 256>}]} {
    %c0_i32 = arith.constant 0 : i32
    %0 = arith.cmpi eq, %arg1, %c0_i32 : i32
    %1 = arith.extui %0 : i1 to i32
    %c0_i32_0 = arith.constant 0 : i32
    %2 = arith.cmpi ne, %1, %c0_i32_0 : i32
    scf.if %2 {
      %cst_9 = arith.constant 0.000000e+00 : f32
      %21 = vector.broadcast %cst_9 : f32 to vector<8x256xf32>
      %c0_10 = arith.constant 0 : index
      %c0_11 = arith.constant 0 : index
      %22 = vector.load %arg10[%c0_10, %c0_11] : memref<8x256xf32, #tpu.memory_space<vmem>>, vector<8x256xf32>
      tpu.vector_store %arg10[%c0_10, %c0_11], %21 {strides = array<i32>} : memref<8x256xf32, #tpu.memory_space<vmem>>, vector<8x256xf32>,
    } else {
    }
    %c0 = arith.constant 0 : index
    %c0_1 = arith.constant 0 : index
    %c0_2 = arith.constant 0 : index
    %3 = vector.load %arg2[%c0, %c0_1, %c0_2] : memref<8x16x256xf32, #tpu.memory_space<vmem>>, vector<8x16x256xf32>
    %4 = tpu.iota {dimensions = array<i32: 1>} : vector<1x16x256xi32>
    %c16_i32 = arith.constant 16 : i32
    %5 = arith.muli %arg1, %c16_i32 : i32
    %6 = vector.broadcast %5 : i32 to vector<1x16x256xi32>
    %7 = arith.addi %4, %6 : vector<1x16x256xi32>
    %c40_i32 = arith.constant 40 : i32
    %8 = vector.broadcast %c40_i32 : i32 to vector<1x16x256xi32>
    %9 = arith.cmpi slt, %7, %8 : vector<1x16x256xi32>
    %cst = arith.constant 0.000000e+00 : f32
    %10 = vector.shape_cast %9 : vector<1x16x256xi1> to vector<1x16x256xi1>
    %11 = vector.broadcast %10 : vector<1x16x256xi1> to vector<8x16x256xi1>
    %12 = vector.broadcast %cst : f32 to vector<8x16x256xf32>
    %13 = arith.select %11, %3, %12 : vector<8x16x256xi1>, vector<8x16x256xf32>
    %c0_3 = arith.constant 0 : index
    %c0_4 = arith.constant 0 : index
    %14 = vector.load %arg10[%c0_3, %c0_4] : memref<8x256xf32, #tpu.memory_space<vmem>>, vector<8x256xf32>
    %cst_5 = arith.constant dense<0.000000e+00> : vector<8x256xf32>
    %15 = vector.multi_reduction <add>, %13, %cst_5 [1] : vector<8x16x256xf32> to vector<8x256xf32>
    %16 = arith.addf %14, %15 : vector<8x256xf32>
    %c0_6 = arith.constant 0 : index
    %c0_7 = arith.constant 0 : index
    %17 = vector.load %arg10[%c0_6, %c0_7] : memref<8x256xf32, #tpu.memory_space<vmem>>, vector<8x256xf32>
    tpu.vector_store %arg10[%c0_6, %c0_7], %16 {strides = array<i32>} : memref<8x256xf32, #tpu.memory_space<vmem>>, vector<8x256xf32>,
    %c2_i32 = arith.constant 2 : i32
    %18 = arith.cmpi eq, %arg1, %c2_i32 : i32
    %19 = arith.extui %18 : i1 to i32
    %c0_i32_8 = arith.constant 0 : i32
    %20 = arith.cmpi ne, %19, %c0_i32_8 : i32
    scf.if %20 {
      %c0_9 = arith.constant 0 : index
      %c0_10 = arith.constant 0 : index
      %21 = vector.load %arg10[%c0_9, %c0_10] : memref<8x256xf32, #tpu.memory_space<vmem>>, vector<8x256xf32>
      %cst_11 = arith.constant 2.500000e-02 : f32
      %22 = vector.broadcast %cst_11 : f32 to vector<8x256xf32>
      %23 = arith.mulf %21, %22 : vector<8x256xf32>
      %24 = arith.truncf %23 : vector<8x256xf32> to vector<8x256xbf16>
      %c0_12 = arith.constant 0 : index
      %c0_13 = arith.constant 0 : index
      %25 = vector.load %arg3[%c0_12, %c0_13] : memref<256x256xbf16, #tpu.memory_space<vmem>>, vector<256x256xbf16>
      %cst_14 = arith.constant dense<0.000000e+00> : vector<8x256xf32>
      %26 = tpu.matmul %24, %25, %cst_14 {dimension_numbers = #tpu.dot_dimension_numbers<[1], [0], [0], [1], [0, 0, 1, 1], [], []>} : vector<8x256xbf16>, vector<256x256xbf16>, vector<8x256xf32> -> vector<8x256xf32>
      %c0_15 = arith.constant 0 : index
      %c0_16 = arith.constant 0 : index
      %27 = vector.load %arg4[%c0_15, %c0_16] : memref<1x256xf32, #tpu.memory_space<vmem>>, vector<1x256xf32>
      %28 = vector.broadcast %27 : vector<1x256xf32> to vector<8x256xf32>
      %29 = arith.addf %26, %28 : vector<8x256xf32>
      %cst_17 = arith.constant dense<0.000000e+00> : vector<8xf32>
      %30 = vector.multi_reduction <add>, %29, %cst_17 [1] : vector<8x256xf32> to vector<8xf32>
      %31 = vector.shape_cast %30 : vector<8xf32> to vector<8x1xf32>
      %cst_18 = arith.constant 2.560000e+02 : f32
      %32 = vector.broadcast %cst_18 : f32 to vector<8x1xf32>
      %33 = arith.divf %31, %32 : vector<8x1xf32>
      %34 = vector.broadcast %33 : vector<8x1xf32> to vector<8x256xf32>
      %35 = arith.subf %29, %34 : vector<8x256xf32>
      %36 = vector.broadcast %33 : vector<8x1xf32> to vector<8x256xf32>
      %37 = arith.subf %29, %36 : vector<8x256xf32>
      %38 = arith.mulf %35, %37 : vector<8x256xf32>
      %cst_19 = arith.constant dense<0.000000e+00> : vector<8xf32>
      %39 = vector.multi_reduction <add>, %38, %cst_19 [1] : vector<8x256xf32> to vector<8xf32>
      %40 = vector.shape_cast %39 : vector<8xf32> to vector<8x1xf32>
      %cst_20 = arith.constant 2.560000e+02 : f32
      %41 = vector.broadcast %cst_20 : f32 to vector<8x1xf32>
      %42 = arith.divf %40, %41 : vector<8x1xf32>
      %43 = vector.broadcast %33 : vector<8x1xf32> to vector<8x256xf32>
      %44 = arith.subf %29, %43 : vector<8x256xf32>
      %cst_21 = arith.constant 9.99999974E-6 : f32
      %45 = vector.broadcast %cst_21 : f32 to vector<8x1xf32>
      %46 = arith.addf %42, %45 : vector<8x1xf32>
      %47 = math.rsqrt %46 : vector<8x1xf32>
      %48 = vector.broadcast %47 : vector<8x1xf32> to vector<8x256xf32>
      %49 = arith.mulf %44, %48 : vector<8x256xf32>
      %c0_22 = arith.constant 0 : index
      %c0_23 = arith.constant 0 : index
      %50 = vector.load %arg5[%c0_22, %c0_23] : memref<1x256xf32, #tpu.memory_space<vmem>>, vector<1x256xf32>
      %51 = vector.broadcast %50 : vector<1x256xf32> to vector<8x256xf32>
      %52 = arith.mulf %49, %51 : vector<8x256xf32>
      %c0_24 = arith.constant 0 : index
      %c0_25 = arith.constant 0 : index
      %53 = vector.load %arg6[%c0_24, %c0_25] : memref<1x256xf32, #tpu.memory_space<vmem>>, vector<1x256xf32>
      %54 = vector.broadcast %53 : vector<1x256xf32> to vector<8x256xf32>
      %55 = arith.addf %52, %54 : vector<8x256xf32>
      %cst_26 = arith.constant 0.000000e+00 : f32
      %56 = vector.broadcast %cst_26 : f32 to vector<8x256xf32>
      %57 = arith.maximumf %55, %56 : vector<8x256xf32>
      %58 = arith.truncf %57 : vector<8x256xf32> to vector<8x256xbf16>
      %c0_27 = arith.constant 0 : index
      %c0_28 = arith.constant 0 : index
      %59 = vector.load %arg7[%c0_27, %c0_28] : memref<256x256xbf16, #tpu.memory_space<vmem>>, vector<256x256xbf16>
      %cst_29 = arith.constant dense<0.000000e+00> : vector<8x256xf32>
      %60 = tpu.matmul %58, %59, %cst_29 {dimension_numbers = #tpu.dot_dimension_numbers<[1], [0], [0], [1], [0, 0, 1, 1], [], []>} : vector<8x256xbf16>, vector<256x256xbf16>, vector<8x256xf32> -> vector<8x256xf32>
      %c0_30 = arith.constant 0 : index
      %c0_31 = arith.constant 0 : index
      %61 = vector.load %arg8[%c0_30, %c0_31] : memref<1x256xf32, #tpu.memory_space<vmem>>, vector<1x256xf32>
      %62 = vector.broadcast %61 : vector<1x256xf32> to vector<8x256xf32>
      %63 = arith.addf %60, %62 : vector<8x256xf32>
      %c0_32 = arith.constant 0 : index
      %c0_33 = arith.constant 0 : index
      %64 = vector.load %arg9[%c0_32, %c0_33] : memref<8x256xf32, #tpu.memory_space<vmem>>, vector<8x256xf32>
      tpu.vector_store %arg9[%c0_32, %c0_33], %63 {strides = array<i32>} : memref<8x256xf32, #tpu.memory_space<vmem>>, vector<8x256xf32>,
    } else {
    }
    return
  }
  func.func @transform_0(%arg0: i32, %arg1: i32) -> (i32, i32, i32) {
    %c0_i32 = arith.constant 0 : i32
    %c0_i32_0 = arith.constant 0 : i32
    return %arg0, %arg1, %c0_i32 : i32, i32, i32
  }
  func.func @transform_1(%arg0: i32, %arg1: i32) -> (i32, i32) {
    %c0_i32 = arith.constant 0 : i32
    %c0_i32_0 = arith.constant 0 : i32
    %c0_i32_1 = arith.constant 0 : i32
    return %c0_i32, %c0_i32_0 : i32, i32
  }
  func.func @transform_2(%arg0: i32, %arg1: i32) -> (i32, i32) {
    %c0_i32 = arith.constant 0 : i32
    %c0_i32_0 = arith.constant 0 : i32
    %c0_i32_1 = arith.constant 0 : i32
    return %c0_i32, %c0_i32_0 : i32, i32
  }
  func.func @transform_3(%arg0: i32, %arg1: i32) -> (i32, i32) {
    %c0_i32 = arith.constant 0 : i32
    %c0_i32_0 = arith.constant 0 : i32
    %c0_i32_1 = arith.constant 0 : i32
    return %c0_i32, %c0_i32_0 : i32, i32
  }
  func.func @transform_4(%arg0: i32, %arg1: i32) -> (i32, i32) {
    %c0_i32 = arith.constant 0 : i32
    %c0_i32_0 = arith.constant 0 : i32
    %c0_i32_1 = arith.constant 0 : i32
    return %c0_i32, %c0_i32_0 : i32, i32
  }
  func.func @transform_5(%arg0: i32, %arg1: i32) -> (i32, i32) {
    %c0_i32 = arith.constant 0 : i32
    %c0_i32_0 = arith.constant 0 : i32
    %c0_i32_1 = arith.constant 0 : i32
    return %c0_i32, %c0_i32_0 : i32, i32
  }
  func.func @transform_6(%arg0: i32, %arg1: i32) -> (i32, i32) {
    %c0_i32 = arith.constant 0 : i32
    %c0_i32_0 = arith.constant 0 : i32
    %c0_i32_1 = arith.constant 0 : i32
    return %c0_i32, %c0_i32_0 : i32, i32
  }
  func.func @transform_7(%arg0: i32, %arg1: i32) -> (i32, i32) {
    %c0_i32 = arith.constant 0 : i32
    %c0_i32_0 = arith.constant 0 : i32
    return %arg0, %c0_i32 : i32, i32
  }
}

</mosaic_0001>

<bundles_post_ra>
// kernel: tpu_custom_call.1
= control target key start
LH: loop header
LB: loop body
LE: loop exit
PB: predicated region body
PF: predicated region fallthrough
CT: control target
= control target key end

     0   :  { %s2087_s0 = inlined_call_operand.hbm [shape: f32[6,40,256], index: 0, kind: input, shape index: {}]   ;;  %s2088_s1 = inlined_call_operand.hbm [shape: bf16[256,256], index: 1, kind: input, shape index: {}]   ;;  %s2089_s2 = inlined_call_operand.vmem [shape: f32[1,256], index: 2, kind: input, shape index: {}]   ;;  %s2090_s3 = inlined_call_operand.vmem [shape: f32[1,256], index: 3, kind: input, shape index: {}]   ;;  %s2091_s4 = inlined_call_operand.vmem [shape: f32[1,256], index: 4, kind: input, shape index: {}]   ;;  %s2092_s5 = inlined_call_operand.hbm [shape: bf16[256,256], index: 5, kind: input, shape index: {}]   ;;  %s2093_s6 = inlined_call_operand.vmem [shape: f32[1,256], index: 6, kind: input, shape index: {}]   ;;  %s2094_s7 = inlined_call_operand.hbm [shape: f32[8,256], index: 7, kind: output, shape index: {}]  }
   0x1   :  { %2101 = sst [smem:[#allocation17_spill]] %s2088_s1 }
   0x2   :  { %2102 = sst [smem:[#allocation18_spill]] %s2092_s5 }
   0x3   :  { %12 = vsyncpa [#allocation4], 0 }
   0x4   :  { %14 = vsyncpa [#allocation4 + $0x1], 0 }
   0x5   :  { %15 = vsyncpa [#allocation7], 0 }
   0x6   :  { %16 = vsyncpa [#allocation5], 0  ;;  %s1728_s24 = smov 0   ;;  %s1730_s25 = smov 0  }
   0x7   :  { %s1732_s26 = smov 0   ;;  %s1734_s27 = smov 0  }
   0x8   :  { %s1736_s28 = smov 0   ;;  %s1738_s29 = smov 0  }
   0x9 LB: > { %2103 = sst [smem:[#allocation15_spill]] %s1671_s28  ;;  %s2098_s30 = sadd.s32 4294967295, %s1675_s29   ;;  %s1675_s29 = sphi %s1738_s29, %s22_s29   ;;  %s1671_s28 = sphi %s1736_s28, %s2117_s28   ;;  %s1667_s27 = sphi %s1734_s27, %s2116_s27   ;;  %s1663_s26 = sphi %s1732_s26, %s2120_s26   ;;  %s1659_s25 = sphi %s1730_s25, %s2119_s25   ;;  %s1655_s24 = sphi %s1728_s24, %s2118_s24  }
   0xa   : > { %s31_s8 = sadd.s32 1, %s1671_s28  ;;  %s43_s9 = sadd.s32 1, %s1663_s26 }
   0xb   : > { %p32_p0 = scmp.ge.s32.totalorder %s31_s8, 3  ;;  %p50_p1 = scmp.ne.s32.totalorder %s1663_s26, %s1659_s25 }
   0xc   : > { %p51_p2 = scmp.eq.s32.totalorder %s1675_s29, 0  ;;  %p56_p4 = scmp.ne.s32.totalorder %s1659_s25, %s1655_s24 }
   0xd   : > { %s2122_s8 = smov (%p32_p0, %s31_s8), 0  ;;  %p1773_p5 = scmp.eq.s32.totalorder %s2098_s30, 0 }
   0xe   : > { %2104 = sst [smem:[#allocation16_spill]] %s2122_s8  ;;  %p1764_p3 = por %p51_p2, %p50_p1 }
   0xf   : > { %s39_s11 = ssub.s32 %s1671_s28, %s2122_s8  ;;  %p1266_p7 = scmp.ge.s32.totalorder %s1675_s29, 1 }
  0x10   : > { %s2106_s12 = scalar_select %p1773_p5, 1, 0 }
  0x11   : > { %p41_p6 = scmp.eq.s32.totalorder %s39_s11, 0  ;;  %p1780_p8 = por %p1773_p5, %p56_p4 }
  0x12   : > { %p219_p9 = scmp.lt.s32.totalorder %s1675_s29, 4  ;;  %s1677_s16 = smov [#allocation6]  }
  0x13   : > { %s2107_s13 = scalar_select %p1780_p8, 1, 0 }
  0x14   : > { %s1786_s14 = scalar_select %p41_p6, %s1663_s26, %s43_s9  }
  0x15   : > { %p1788_p10 = pnand %p1266_p7, %p219_p9  ;;  %s231_s17 = sshll.u32 %s1677_s16, 4  ;;  %s232_s17 = int_to_ptr.vmem [resolvable:$true] %s231_s17 }
  0x16   : > { %s1678_s19 = smov [#allocation8]   ;;  %s1552_s21 = scalar_lea.vmem %s232_s17, 4096 }
  0x17   : > { %p1371_p11 = pneg %p1788_p10  ;;  %s253_s20 = sshll.u32 %s1678_s19, 4  ;;  %s254_s20 = int_to_ptr.vmem [resolvable:$true] %s253_s20 }
  0x18   : > { %p1553_p0 = scmp.ne.s32.totalorder %s232_s17, %s1552_s21  ;;  %p1560_p4 = scmp.lt.s32.totalorder %s232_s17, %s232_s17 }
  0x19   : > { %p1796_p12 = pnand %p1371_p11, %p1773_p5  ;;  %p1561_p6 = scmp.lt.s32.totalorder %s1552_s21, %s1552_s21 }
  0x1b   : > { %p1543_p13 = pneg %p1796_p12  ;;  %p1562_p7 = por %p1561_p6, %p1560_p4 }
  0x1d   : > { %p1555_p1 = pnand %p1553_p0, %p1543_p13 }
  0x1f   : > { %p1556_p2 = pneg %p1555_p1 }
  0x21   : > { %p1563_p9 = pnand %p1562_p7, %p1556_p2 }
  0x23   : > { %1566 = shalt.err (!%p1563_p9)
}
  0x24   : > { %s1679_s22 = smov 128   ;;  %s1680_s23 = smov 8  }
  0x25   : > { %s2110_s1 = sld [smem:[#allocation17_spill]]  ;;  %s1578_s11 = scalar_lea.vmem %s254_s20, 4096 }
  0x26   : > { %p1579_p11 = scmp.ne.s32.totalorder %s254_s20, %s1578_s11  ;;  %p1586_p5 = scmp.lt.s32.totalorder %s254_s20, %s254_s20 }
  0x27   : > { %p1587_p8 = scmp.lt.s32.totalorder %s1578_s11, %s1578_s11 }
  0x28   : > { %p1581_p0 = pnand %p1579_p11, %p1543_p13 }
  0x29   : > { %p1588_p4 = por %p1587_p8, %p1586_p5 }
  0x2a   : > { %p1582_p1 = pneg %p1581_p0 }
  0x2b   : > { %1374 = dma.hbm_to_vmem [thread:$0]  (!%p1796_p12), %s2110_s1, 4096, %s232_s17, [#allocation7], %s1679_s22, %s1679_s22, %s1680_s23  }
  0x2c   : > { %p1589_p2 = pnand %p1588_p4, %p1582_p1 }
  0x2e   : > { %1592 = shalt.err (!%p1589_p2)
}
  0x2f   : > { %s2111_s5 = sld [smem:[#allocation18_spill]]  ;;  %p1269_p6 = scmp.ge.s32.totalorder %s1675_s29, 3 }
  0x31   : > { %266 = sbr.rel (%p1269_p6) target bundleno = 77 (0x4d), region = 40 }
  0x35   : > { %1377 = dma.hbm_to_vmem [thread:$0]  (!%p1796_p12), %s2111_s5, 4096, %s254_s20, [#allocation7], %s1679_s22, %s1679_s22, %s1680_s23  }
  0x36   : > { %269 = sbr.rel (!%p1764_p3) target bundleno = 77 (0x4d), region = 44 }
  0x3b   : > { %s270_s17 = sand.u32 1, %s1663_s26   ;;  %s1271_s21 = sshll.u32 %s1671_s28, 1 }
  0x3c   : > { %s1270_s24 = sshll.u32 %s270_s17, 8  ;;  %s279_s9 = ssub.s32 5, %s1271_s21 }
  0x3d   : > { %p280_p5 = scmp.lt.s32.totalorder %s279_s9, 2  ;;  %s271_s30 = scalar_lea.sflag [#allocation4], %s270_s17 }
  0x3e   : > { %s274_s1 = scalar_lea.vmem [#allocation3], %s1270_s24 }
  0x3f   : > { %s2124_s9 = smov (!%p280_p5, %s279_s9), 2 }
  0x40   : > { %s1272_s11 = smul.u32 1536, %s2124_s9 }
  0x42   : > { %s285_s18 = ssub.s32 4096, %s1272_s11 }
  0x43   : > { %286 = vsyncadd %s271_s30, %s285_s18  ;;  %p1273_p8 = scmp.ne.s32.totalorder %s1272_s11, 0  ;;  %s1357_s20 = sshll.u32 %s1671_s28, 9 }
  0x44   : > { %s292_s10 = scalar_lea.hbm %s2087_s0, %s1357_s20  ;;  %s299_s16 = sld [smem:[#allocation0]]  }
  0x45   : > { %s307_s19 = sshll.u32 %s274_s1, 4  ;;  %s1681_s5 = smov 1280   ;;  %s308_s19 = int_to_ptr.vmem [resolvable:$true] %s307_s19 }
  0x46   : > { %314 = sst [smem:[#allocation11]] %s1681_s5  ;;  %s1682_s21 = smov 512  }
  0x47   : > { %318 = sst [smem:[#allocation11 + $0x2]] %s2124_s9  ;;  %s1683_s8 = smov 256  }
  0x48   : > { %316 = sst [smem:[#allocation11 + $0x1]] %s1682_s21  ;;  %s1684_s18 = smov 16  }
  0x49   : > { %320 = sst [smem:[#allocation11 + $0x3]] %s1683_s8  ;;  %s1685_s28 = smov 131072  }
  0x4a   : > { %s1278_s17 = sshll.u32 %s299_s16, 26  ;;  %322 = sst [smem:[#allocation11 + $0x4]] %s1683_s8 }
  0x4b   : > { %s1279_s24 = sadd.s32 134217728, %s1278_s17  ;;  %324 = sst [smem:[#allocation11 + $0x5]] %s1684_s18 }
  0x4c   : > { %326 = dma.general (%p1273_p8), %s292_s10, %s1272_s11, %s308_s19, %s271_s30, %s1685_s28, [#allocation11], %s1279_s24, 0  }
  0x4d PF: > { %332 = sbr.rel (%p1788_p10) target bundleno = 938 (0x3aa), region = 48  ;;  %s334_s1 = sand.u32 (!%p1788_p10), 1, %s1659_s25  }
  0x4e   : > { %s1282_s5 = sshll.u32 (!%p1788_p10), %s334_s1, 8  ;;  %s335_s9 = scalar_lea.sflag (!%p1788_p10), [#allocation4], %s334_s1 }
  0x4f   : > { %s1831_s20 = scalar_lea.vmem (!%p1788_p10), [#allocation3], %s1282_s5  ;;  %p2112_p3 = scmp.ne.s32.totalorder (!%p1788_p10), %s2107_s13, 0 }
  0x52   : > { %1642 = dma.done.wait (%p2112_p3), %s335_s9, 4096  }
  0x53   : > { %1644 = vsyncadd (%p2112_p3), %s335_s9, 4294963200  ;;  %p2113_p12 = scmp.ne.s32.totalorder %s2106_s12, 0 }
  0x55   : > { %1646 = dma.done.wait (%p2113_p12), [#allocation7], 8192  }
  0x56   : > { %1648 = vsyncadd (%p2113_p12), [#allocation7], 4294959104  ;;  %p1285_p10 = scmp.ne.s32.totalorder %s1667_s27, 0 }
  0x58   : > { %384 = sbr.rel (%p1285_p10) target bundleno = 95 (0x5f), region = 64 }
  0x5d   : > { %v1686_v0 = vmov 0.0  }
  0x5e   : > { %385 = vst [vmem:[#allocation2] sm:$0xff] %v1686_v0  ;;  %386 = vst [vmem:[#allocation2 + $0x8] sm:$0xff] %v1686_v0 }
  0x5f PF: > { %v419_v1 = vlaneseq  ;;  %s1286_s28 = sshll.u32 %s1667_s27, 4  ;;  %v387_v4 = vld [vmem:[%s1831_s20] sm:$0xff]  ;;  %v388_v5 = vld [vmem:[%s1831_s20 + $0x8] sm:$0xff]  ;;  %v389_v9 = vld [vmem:[%s1831_s20 + $0x10] sm:$0xff]  ;;  %vm594_vm2 = vcmask 1041409   ;;  %vm596_vm3 = vcmask 1042434  }
  0x60   : > { %v423_v2 = vstv %s1286_s28  ;;  %v391_v6 = vld [vmem:[%s1831_s20 + $0x20] sm:$0xff]  ;;  %v390_v10 = vld [vmem:[%s1831_s20 + $0x18] sm:$0xff]  ;;  %v392_v11 = vld [vmem:[%s1831_s20 + $0x28] sm:$0xff]  ;;  %vm598_vm4 = vcmask 1043459   ;;  %vm600_vm5 = vcmask 1044484   ;;  %vm602_vm6 = vcmask 1045509  }
  0x61   : > { %v1843_v3 = vshrl.u32 %v419_v1, 7  ;;  %v393_v12 = vld [vmem:[%s1831_s20 + $0x30] sm:$0xff]  ;;  %v395_v13 = vld [vmem:[%s1831_s20 + $0x40] sm:$0xff]  ;;  %v394_v14 = vld [vmem:[%s1831_s20 + $0x38] sm:$0xff]  ;;  %vm604_vm7 = vcmask 1046534   ;;  %vm606_vm8 = vcmask 1047559  }
  0x62   : > { %v396_v15 = vld [vmem:[%s1831_s20 + $0x48] sm:$0xff]  ;;  %v397_v16 = vld [vmem:[%s1831_s20 + $0x50] sm:$0xff]  ;;  %v398_v17 = vld [vmem:[%s1831_s20 + $0x58] sm:$0xff]  ;;  %p1287_p13 = scmp.ne.s32.totalorder %s1667_s27, 2 }
  0x63   : > { %v421_v7 = vadd.s32 8, %v1843_v3  ;;  %v1850_v8 = vadd.s32 %v423_v2, %v1843_v3  ;;  %v399_v19 = vld [vmem:[%s1831_s20 + $0x60] sm:$0xff]  ;;  %v400_v20 = vld [vmem:[%s1831_s20 + $0x68] sm:$0xff]  ;;  %v401_v21 = vld [vmem:[%s1831_s20 + $0x70] sm:$0xff] }
  0x64   : > { %v402_v22 = vld [vmem:[%s1831_s20 + $0x78] sm:$0xff]  ;;  %v403_v23 = vld [vmem:[%s1831_s20 + $0x80] sm:$0xff]  ;;  %v404_v24 = vld [vmem:[%s1831_s20 + $0x88] sm:$0xff] }
  0x65   : > { %v1861_v18 = vadd.s32 %v423_v2, %v421_v7  ;;  %vm426_vm0 = vcmp.lt.s32.totalorder %v1850_v8, 40  ;;  %v405_v25 = vld [vmem:[%s1831_s20 + $0x90] sm:$0xff]  ;;  %v406_v26 = vld [vmem:[%s1831_s20 + $0x98] sm:$0xff]  ;;  %v407_v27 = vld [vmem:[%s1831_s20 + $0xa0] sm:$0xff] }
  0x66   : > { %v408_v28 = vld [vmem:[%s1831_s20 + $0xa8] sm:$0xff]  ;;  %v432_v29 = vsel %vm426_vm0, %v387_v4, 0.0  ;;  %v433_v30 = vsel %vm426_vm0, %v388_v5, 0.0  ;;  %v436_v31 = vsel %vm426_vm0, %v391_v6, 0.0  ;;  %v437_v32 = vsel %vm426_vm0, %v392_v11, 0.0  ;;  %v409_v33 = vld [vmem:[%s1831_s20 + $0xb0] sm:$0xff] }
  0x67   : > { %vm427_vm1 = vcmp.lt.s32.totalorder %v1861_v18, 40  ;;  %v410_v34 = vld [vmem:[%s1831_s20 + $0xb8] sm:$0xff]  ;;  %v440_v38 = vsel %vm426_vm0, %v395_v13, 0.0  ;;  %v411_v39 = vld [vmem:[%s1831_s20 + $0xc0] sm:$0xff]  ;;  %v412_v40 = vld [vmem:[%s1831_s20 + $0xc8] sm:$0xff]  ;;  %v441_v42 = vsel %vm426_vm0, %v396_v15, 0.0 }
  0x68   : > { %v434_v35 = vsel %vm427_vm1, %v389_v9, 0.0  ;;  %v435_v36 = vsel %vm427_vm1, %v390_v10, 0.0  ;;  %v438_v37 = vsel %vm427_vm1, %v393_v12, 0.0  ;;  %v439_v41 = vsel %vm427_vm1, %v394_v14, 0.0  ;;  %v413_v45 = vld [vmem:[%s1831_s20 + $0xd0] sm:$0xff]  ;;  %v414_v46 = vld [vmem:[%s1831_s20 + $0xd8] sm:$0xff] }
  0x69   : > { %v442_v43 = vsel %vm427_vm1, %v397_v16, 0.0  ;;  %v443_v44 = vsel %vm427_vm1, %v398_v17, 0.0  ;;  %v444_v47 = vsel %vm426_vm0, %v399_v19, 0.0  ;;  %v445_v48 = vsel %vm426_vm0, %v400_v20, 0.0 }
  0x6a   : > { %v446_v49 = vsel %vm427_vm1, %v401_v21, 0.0  ;;  %v447_v50 = vsel %vm427_vm1, %v402_v22, 0.0  ;;  %v1915_v51 = vsel %vm426_vm0, %v403_v23, 0.0  ;;  %v1919_v52 = vsel %vm426_vm0, %v404_v24, 0.0 }
  0x6b   : > { %v1923_v53 = vsel %vm427_vm1, %v405_v25, 0.0  ;;  %v1927_v54 = vsel %vm427_vm1, %v406_v26, 0.0  ;;  %v1931_v55 = vsel %vm426_vm0, %v407_v27, 0.0  ;;  %v1935_v56 = vsel %vm426_vm0, %v408_v28, 0.0 }
  0x6c   : > { %v1939_v57 = vsel %vm427_vm1, %v409_v33, 0.0  ;;  %v1943_v58 = vsel %vm427_vm1, %v410_v34, 0.0  ;;  %v1947_v59 = vsel %vm426_vm0, %v411_v39, 0.0  ;;  %v1951_v60 = vsel %vm426_vm0, %v412_v40, 0.0 }
  0x6d   : > { %v1955_v61 = vsel %vm427_vm1, %v413_v45, 0.0  ;;  %v1959_v62 = vsel %vm427_vm1, %v414_v46, 0.0  ;;  %v466_v63 = vadd.f32 %v434_v35, %v432_v29  ;;  %v473_v0 = vadd.f32 %v435_v36, %v433_v30  ;;  %v415_v30 = vld [vmem:[%s1831_s20 + $0xe0] sm:$0xff]  ;;  %v416_v35 = vld [vmem:[%s1831_s20 + $0xe8] sm:$0xff]  ;;  %v417_v36 = vld [vmem:[%s1831_s20 + $0xf0] sm:$0xff] }
  0x6e   : > { %v480_v1 = vadd.f32 %v438_v37, %v436_v31  ;;  %v487_v2 = vadd.f32 %v439_v41, %v437_v32  ;;  %v494_v4 = vadd.f32 %v442_v43, %v440_v38  ;;  %v501_v5 = vadd.f32 %v443_v44, %v441_v42  ;;  %v418_v37 = vld [vmem:[%s1831_s20 + $0xf8] sm:$0xff] }
  0x6f   : > { %v508_v6 = vadd.f32 %v446_v49, %v444_v47  ;;  %v515_v7 = vadd.f32 %v447_v50, %v445_v48  ;;  %v467_v9 = vrot.slane %v466_v63, 4  ;;  %v474_v10 = vrot.slane %v473_v0, 4 }
  0x70   : > { %v481_v11 = vrot.slane %v480_v1, 4  ;;  %v488_v12 = vrot.slane %v487_v2, 4  ;;  %v495_v13 = vrot.slane %v494_v4, 4  ;;  %v502_v14 = vrot.slane %v501_v5, 4 }
  0x71   : > { %v509_v15 = vrot.slane %v508_v6, 4  ;;  %v516_v16 = vrot.slane %v515_v7, 4  ;;  %v468_v17 = vadd.f32 %v467_v9, %v466_v63  ;;  %v475_v19 = vadd.f32 %v474_v10, %v473_v0 }
  0x72   : > { %v482_v20 = vadd.f32 %v481_v11, %v480_v1  ;;  %v489_v21 = vadd.f32 %v488_v12, %v487_v2  ;;  %v496_v22 = vadd.f32 %v495_v13, %v494_v4  ;;  %v503_v23 = vadd.f32 %v502_v14, %v501_v5 }
  0x73   : > { %v510_v24 = vadd.f32 %v509_v15, %v508_v6  ;;  %v517_v25 = vadd.f32 %v516_v16, %v515_v7  ;;  %v469_v26 = vrot.slane %v468_v17, 2  ;;  %v476_v27 = vrot.slane %v475_v19, 2 }
  0x74   : > { %v483_v28 = vrot.slane %v482_v20, 2  ;;  %v490_v29 = vrot.slane %v489_v21, 2  ;;  %v497_v31 = vrot.slane %v496_v22, 2  ;;  %v504_v32 = vrot.slane %v503_v23, 2 }
  0x75   : > { %v511_v33 = vrot.slane %v510_v24, 2  ;;  %v518_v34 = vrot.slane %v517_v25, 2  ;;  %v470_v38 = vadd.f32 %v469_v26, %v468_v17  ;;  %v477_v39 = vadd.f32 %v476_v27, %v475_v19 }
  0x76   : > { %v484_v40 = vadd.f32 %v483_v28, %v482_v20  ;;  %v491_v41 = vadd.f32 %v490_v29, %v489_v21  ;;  %v1965_v42 = vadd.f32 %v497_v31, %v496_v22  ;;  %v1967_v43 = vadd.f32 %v504_v32, %v503_v23 }
  0x77   : > { %v1969_v44 = vadd.f32 %v511_v33, %v510_v24  ;;  %v1971_v45 = vadd.f32 %v518_v34, %v517_v25  ;;  %v471_v46 = vrot.slane %v470_v38, 1  ;;  %v478_v47 = vrot.slane %v477_v39, 1 }
  0x78   : > { %v485_v48 = vrot.slane %v484_v40, 1  ;;  %v492_v49 = vrot.slane %v491_v41, 1  ;;  %v460_v50 = vsel %vm426_vm0, %v415_v30, 0.0  ;;  %v461_v63 = vsel %vm426_vm0, %v416_v35, 0.0 }
  0x79   : > { %v462_v0 = vsel %vm427_vm1, %v417_v36, 0.0  ;;  %v463_v1 = vsel %vm427_vm1, %v418_v37, 0.0  ;;  %v499_v2 = vrot.slane %v1965_v42, 1  ;;  %v506_v4 = vrot.slane %v1967_v43, 1 }
  0x7a   : > { %v513_v5 = vrot.slane %v1969_v44, 1  ;;  %v520_v6 = vrot.slane %v1971_v45, 1  ;;  %v1985_v7 = vadd.f32 %v471_v46, %v470_v38  ;;  %v1987_v9 = vadd.f32 %v478_v47, %v477_v39 }
  0x7b   : > { %v1989_v8 = vadd.f32 %v485_v48, %v484_v40  ;;  %v1991_v10 = vadd.f32 %v492_v49, %v491_v41  ;;  %v522_v18 = vadd.f32 %v1923_v53, %v1915_v51  ;;  %v529_v11 = vadd.f32 %v1927_v54, %v1919_v52 }
  0x7c   : > { %v536_v12 = vadd.f32 %v1939_v57, %v1931_v55  ;;  %v543_v13 = vadd.f32 %v1943_v58, %v1935_v56  ;;  %v550_v14 = vadd.f32 %v1955_v61, %v1947_v59  ;;  %v557_v15 = vadd.f32 %v1959_v62, %v1951_v60 }
  0x7d   : > { %v564_v16 = vadd.f32 %v462_v0, %v460_v50  ;;  %v571_v17 = vadd.f32 %v463_v1, %v461_v63  ;;  %v523_v19 = vrot.slane %v522_v18, 4  ;;  %v530_v20 = vrot.slane %v529_v11, 4 }
  0x7e   : > { %v537_v51 = vrot.slane %v536_v12, 4  ;;  %v544_v53 = vrot.slane %v543_v13, 4  ;;  %v551_v21 = vrot.slane %v550_v14, 4  ;;  %v558_v52 = vrot.slane %v557_v15, 4 }
  0x7f   : > { %v565_v54 = vrot.slane %v564_v16, 4  ;;  %v572_v22 = vrot.slane %v571_v17, 4  ;;  %v524_v55 = vadd.f32 %v523_v19, %v522_v18  ;;  %v531_v57 = vadd.f32 %v530_v20, %v529_v11  ;;  %v465_v19 = vld [vmem:[#allocation2 + $0x8] sm:$0xff] }
  0x80   : > { %v538_v56 = vadd.f32 %v537_v51, %v536_v12  ;;  %v545_v58 = vadd.f32 %v544_v53, %v543_v13  ;;  %v552_v59 = vadd.f32 %v551_v21, %v550_v14  ;;  %v559_v61 = vadd.f32 %v558_v52, %v557_v15 }
  0x81   : > { %v566_v23 = vadd.f32 %v565_v54, %v564_v16  ;;  %v573_v60 = vadd.f32 %v572_v22, %v571_v17  ;;  %v525_v62 = vrot.slane %v524_v55, 2  ;;  %v532_v24 = vrot.slane %v531_v57, 2 }
  0x82   : > { %v539_v25 = vrot.slane %v538_v56, 2  ;;  %v546_v26 = vrot.slane %v545_v58, 2  ;;  %v553_v27 = vrot.slane %v552_v59, 2  ;;  %v560_v28 = vrot.slane %v559_v61, 2 }
  0x83   : > { %v567_v29 = vrot.slane %v566_v23, 2  ;;  %v574_v30 = vrot.slane %v573_v60, 2  ;;  %v526_v31 = vadd.f32 %v525_v62, %v524_v55  ;;  %v533_v32 = vadd.f32 %v532_v24, %v531_v57 }
  0x84   : > { %v540_v33 = vadd.f32 %v539_v25, %v538_v56  ;;  %v547_v34 = vadd.f32 %v546_v26, %v545_v58  ;;  %v554_v35 = vadd.f32 %v553_v27, %v552_v59  ;;  %v561_v36 = vadd.f32 %v560_v28, %v559_v61 }
  0x85   : > { %v568_v37 = vadd.f32 %v567_v29, %v566_v23  ;;  %v575_v38 = vadd.f32 %v574_v30, %v573_v60  ;;  %v527_v39 = vrot.slane %v526_v31, 1  ;;  %v534_v40 = vrot.slane %v533_v32, 1 }
  0x86   : > { %v541_v41 = vrot.slane %v540_v33, 1  ;;  %v548_v46 = vrot.slane %v547_v34, 1  ;;  %v500_v47 = vadd.f32 %v499_v2, %v1965_v42  ;;  %v507_v48 = vadd.f32 %v506_v4, %v1967_v43 }
  0x87   : > { %v555_v49 = vrot.slane %v554_v35, 1  ;;  %v562_v50 = vrot.slane %v561_v36, 1  ;;  %v514_v63 = vadd.f32 %v513_v5, %v1969_v44  ;;  %v521_v0 = vadd.f32 %v520_v6, %v1971_v45 }
  0x88   : > { %v569_v1 = vrot.slane %v568_v37, 1  ;;  %v576_v18 = vrot.slane %v575_v38, 1  ;;  %v528_v11 = vadd.f32 %v527_v39, %v526_v31  ;;  %v535_v12 = vadd.f32 %v534_v40, %v533_v32 }
  0x89   : > { %v542_v13 = vadd.f32 %v541_v41, %v540_v33  ;;  %v549_v14 = vadd.f32 %v548_v46, %v547_v34  ;;  %v595_v42 = vsel %vm594_vm2, %v1989_v8, %v1985_v7  ;;  %v608_v43 = vsel %vm594_vm2, %v1991_v10, %v1987_v9  ;;  %v464_v8 = vld [vmem:[#allocation2] sm:$0xff] }
  0x8a   : > { %v556_v2 = vadd.f32 %v555_v49, %v554_v35  ;;  %v563_v44 = vadd.f32 %v562_v50, %v561_v36  ;;  %v597_v45 = vsel %vm596_vm3, %v500_v47, %v595_v42  ;;  %v609_v4 = vsel %vm596_vm3, %v507_v48, %v608_v43 }
  0x8b   : > { %v570_v5 = vadd.f32 %v569_v1, %v568_v37  ;;  %v577_v6 = vadd.f32 %v576_v18, %v575_v38  ;;  %v599_v15 = vsel %vm598_vm4, %v514_v63, %v597_v45  ;;  %v610_v16 = vsel %vm598_vm4, %v521_v0, %v609_v4 }
  0x8c   : > { %v601_v17 = vsel %vm600_vm5, %v528_v11, %v599_v15  ;;  %v611_v7 = vsel %vm600_vm5, %v535_v12, %v610_v16 }
  0x8d   : > { %v603_v9 = vsel %vm602_vm6, %v542_v13, %v601_v17  ;;  %v612_v10 = vsel %vm602_vm6, %v549_v14, %v611_v7 }
  0x8e   : > { %v605_v20 = vsel %vm604_vm7, %v556_v2, %v603_v9  ;;  %v613_v51 = vsel %vm604_vm7, %v563_v44, %v612_v10  ;;  %624 = sbr.rel (%p1287_p13) target bundleno = 923 (0x39b), region = 68 }
  0x8f   : > { %v607_v53 = vsel %vm606_vm8, %v570_v5, %v605_v20  ;;  %v614_v21 = vsel %vm606_vm8, %v577_v6, %v613_v51 }
  0x90   : > { %v617_v52 = vadd.f32 %v607_v53, %v464_v8  ;;  %v618_v54 = vadd.f32 %v614_v21, %v465_v19 }
  0x92   : > { %619 = vst [vmem:[#allocation2] sm:$0xff] %v617_v52  ;;  %620 = vst [vmem:[#allocation2 + $0x8] sm:$0xff] %v618_v54 }
  0x93   : > { %v1443_v22 = vld [vmem:[#allocation6 + $0x74] ss:$8 sps:$4 sm:$0xff]   ;;  %v1445_v55 = vld [vmem:[#allocation6 + $0x70] ss:$8 sps:$4 sm:$0xff]   ;;  %v1446_v57 = vld [vmem:[#allocation6 + $0x64] ss:$8 sps:$4 sm:$0xff]  }
  0x94   : > { %835 = vmatprep.subr.bf16.mxu0 %v1443_v22  ;;  %v1448_v56 = vld [vmem:[#allocation6 + $0x60] ss:$8 sps:$4 sm:$0xff]   ;;  %v1449_v58 = vld [vmem:[#allocation6 + $0x54] ss:$8 sps:$4 sm:$0xff]   ;;  %v1451_v59 = vld [vmem:[#allocation6 + $0x50] ss:$8 sps:$4 sm:$0xff]  }
  0x95   : > { %836 = vmatpush1.bf16.msra.mxu0 %v1445_v55  ;;  %v1452_v61 = vld [vmem:[#allocation6 + $0x44] ss:$8 sps:$4 sm:$0xff]   ;;  %v1454_v23 = vld [vmem:[#allocation6 + $0x40] ss:$8 sps:$4 sm:$0xff]   ;;  %v1455_v60 = vld [vmem:[#allocation6 + $0x34] ss:$8 sps:$4 sm:$0xff]  }
  0x96   : > { %837 = vmatprep.subr.bf16.mxu0 %v1446_v57  ;;  %v1457_v62 = vld [vmem:[#allocation6 + $0x30] ss:$8 sps:$4 sm:$0xff]   ;;  %v1458_v24 = vld [vmem:[#allocation6 + $0x24] ss:$8 sps:$4 sm:$0xff]   ;;  %v1460_v25 = vld [vmem:[#allocation6 + $0x20] ss:$8 sps:$4 sm:$0xff]  }
  0x97   : > { %v1461_v26 = vld [vmem:[#allocation6 + $0x14] ss:$8 sps:$4 sm:$0xff]   ;;  %v1463_v28 = vld [vmem:[#allocation6 + $0x10] ss:$8 sps:$4 sm:$0xff]   ;;  %v1464_v29 = vld [vmem:[#allocation6 + $0x4] ss:$8 sps:$4 sm:$0xff]  }
  0x98   : > { %v1466_v32 = vld [vmem:[#allocation6] ss:$8 sps:$4 sm:$0xff]   ;;  %v1467_v33 = vld [vmem:[#allocation6 + $0xf4] ss:$8 sps:$4 sm:$0xff]   ;;  %v1469_v34 = vld [vmem:[#allocation6 + $0xf0] ss:$8 sps:$4 sm:$0xff]  }
  0x99   : > { %838 = vmatpush1.bf16.msra.mxu0 %v1448_v56  ;;  %v626_v27 = vld [vmem:[#allocation2 + $0x8] sm:$0xff]  ;;  %v1470_v35 = vld [vmem:[#allocation6 + $0xe4] ss:$8 sps:$4 sm:$0xff]   ;;  %v1472_v36 = vld [vmem:[#allocation6 + $0xe0] ss:$8 sps:$4 sm:$0xff]   ;;  %v2027_v12 = vsub.s32 0, %v1843_v3 }
  0x9a   : > { %839 = vmatprep.subr.bf16.mxu0 %v1449_v58  ;;  %v628_v30 = vmul.f32 0.025, %v626_v27  ;;  %v1473_v37 = vld [vmem:[#allocation6 + $0xd4] ss:$8 sps:$4 sm:$0xff]   ;;  %v1475_v38 = vld [vmem:[#allocation6 + $0xd0] ss:$8 sps:$4 sm:$0xff]  }
  0x9b   : > { %v1476_v39 = vld [vmem:[#allocation6 + $0xc4] ss:$8 sps:$4 sm:$0xff]   ;;  %v1478_v40 = vld [vmem:[#allocation6 + $0xc0] ss:$8 sps:$4 sm:$0xff]   ;;  %v1479_v41 = vld [vmem:[#allocation6 + $0xb4] ss:$8 sps:$4 sm:$0xff]  }
  0x9c   : > { %v630_v31 = vpack.c.bf16 %v628_v30, %v628_v30  ;;  %v1481_v46 = vld [vmem:[#allocation6 + $0xb0] ss:$8 sps:$4 sm:$0xff]   ;;  %v1482_v47 = vld [vmem:[#allocation6 + $0xa4] ss:$8 sps:$4 sm:$0xff]   ;;  %v1484_v48 = vld [vmem:[#allocation6 + $0xa0] ss:$8 sps:$4 sm:$0xff]  }
  0x9d   : > { %840 = vmatpush1.bf16.msra.mxu0 %v1451_v59  ;;  %v1485_v49 = vld [vmem:[#allocation6 + $0x94] ss:$8 sps:$4 sm:$0xff]   ;;  %v1487_v50 = vld [vmem:[#allocation6 + $0x90] ss:$8 sps:$4 sm:$0xff]   ;;  %v1488_v0 = vld [vmem:[#allocation6 + $0x84] ss:$8 sps:$4 sm:$0xff]  }
  0x9e   : > { %841 = vmatprep.subr.bf16.mxu0 %v1452_v61  ;;  %867 = vmatprep.mubr.bf16.mxu0 %v630_v31  ;;  %v625_v63 = vld [vmem:[#allocation2] sm:$0xff]  ;;  %v1490_v18 = vld [vmem:[#allocation6 + $0x80] ss:$8 sps:$4 sm:$0xff]   ;;  %v2030_v13 = vsub.s32 1, %v1843_v3  ;;  %v1494_v3 = vld [vmem:[#allocation8 + $0x64] ss:$8 sps:$4 sm:$0xff]  }
  0x9f   : > { %v627_v1 = vmul.f32 0.025, %v625_v63  ;;  %v663_v14 = vld [vmem:[%s2089_s2] sm:$0x3]  ;;  %v1491_v16 = vld [vmem:[#allocation8 + $0x74] ss:$8 sps:$4 sm:$0xff]  }
  0xa0   : > { %v668_v42 = vrot.slane %v663_v14, %v2027_v12  ;;  %v672_v43 = vrot.slane %v663_v14, %v2030_v13  ;;  %v1493_v17 = vld [vmem:[#allocation8 + $0x70] ss:$8 sps:$4 sm:$0xff]   ;;  %1129 = vmatprep.subr.bf16.mxu1 %v1491_v16  ;;  %v1496_v7 = vld [vmem:[#allocation8 + $0x60] ss:$8 sps:$4 sm:$0xff]   ;;  %v1497_v8 = vld [vmem:[#allocation8 + $0x54] ss:$8 sps:$4 sm:$0xff]  }
  0xa1   : > { %842 = vmatpush1.bf16.msra.mxu0 %v1454_v23  ;;  %v629_v11 = vpack.c.bf16 %v627_v1, %v627_v1  ;;  %1130 = vmatpush1.bf16.msra.mxu1 %v1493_v17  ;;  %v1499_v19 = vld [vmem:[#allocation8 + $0x50] ss:$8 sps:$4 sm:$0xff]   ;;  %v1500_v9 = vld [vmem:[#allocation8 + $0x44] ss:$8 sps:$4 sm:$0xff]   ;;  %v1502_v10 = vld [vmem:[#allocation8 + $0x40] ss:$8 sps:$4 sm:$0xff]  }
  0xa2   : > { %843 = vmatprep.subr.bf16.mxu0 %v1455_v60  ;;  %1131 = vmatprep.subr.bf16.mxu1 %v1494_v3  ;;  %v1503_v20 = vld [vmem:[#allocation8 + $0x34] ss:$8 sps:$4 sm:$0xff]   ;;  %v1505_v51 = vld [vmem:[#allocation8 + $0x30] ss:$8 sps:$4 sm:$0xff]   ;;  %v1506_v53 = vld [vmem:[#allocation8 + $0x24] ss:$8 sps:$4 sm:$0xff]  }
  0xa3   : > { %v1508_v21 = vld [vmem:[#allocation8 + $0x20] ss:$8 sps:$4 sm:$0xff]   ;;  %v1509_v52 = vld [vmem:[#allocation8 + $0x14] ss:$8 sps:$4 sm:$0xff]   ;;  %v1511_v54 = vld [vmem:[#allocation8 + $0x10] ss:$8 sps:$4 sm:$0xff]  }
  0xa4   : > { %v1512_v22 = vld [vmem:[#allocation8 + $0x4] ss:$8 sps:$4 sm:$0xff]   ;;  %v1514_v55 = vld [vmem:[#allocation8] ss:$8 sps:$4 sm:$0xff]   ;;  %v1515_v57 = vld [vmem:[#allocation8 + $0xf4] ss:$8 sps:$4 sm:$0xff]  }
  0xa5   : > { %844 = vmatpush1.bf16.msra.mxu0 %v1457_v62  ;;  %1132 = vmatpush1.bf16.msra.mxu1 %v1496_v7  ;;  %v1517_v56 = vld [vmem:[#allocation8 + $0xf0] ss:$8 sps:$4 sm:$0xff]   ;;  %v1521_v27 = vld [vmem:[#allocation8 + $0xd4] ss:$8 sps:$4 sm:$0xff]   ;;  %v1526_v30 = vld [vmem:[#allocation8 + $0xc0] ss:$8 sps:$4 sm:$0xff]  }
  0xa6   : > { %845 = vmatprep.subr.bf16.mxu0 %v1458_v24  ;;  %1133 = vmatprep.subr.bf16.mxu1 %v1497_v8  ;;  %v1527_v31 = vld [vmem:[#allocation8 + $0xb4] ss:$8 sps:$4 sm:$0xff]  }
  0xa9   : > { %846 = vmatpush1.bf16.msra.mxu0 %v1460_v25  ;;  %1134 = vmatpush1.bf16.msra.mxu1 %v1499_v19  ;;  %v1518_v25 = vld [vmem:[#allocation8 + $0xe4] ss:$8 sps:$4 sm:$0xff]  }
  0xaa   : > { %847 = vmatprep.subr.bf16.mxu0 %v1461_v26  ;;  %1135 = vmatprep.subr.bf16.mxu1 %v1500_v9  ;;  %v1520_v26 = vld [vmem:[#allocation8 + $0xe0] ss:$8 sps:$4 sm:$0xff]  }
  0xad   : > { %848 = vmatpush1.bf16.msra.mxu0 %v1463_v28  ;;  %1136 = vmatpush1.bf16.msra.mxu1 %v1502_v10  ;;  %v1523_v28 = vld [vmem:[#allocation8 + $0xd0] ss:$8 sps:$4 sm:$0xff]  }
  0xae   : > { %849 = vmatprep.subr.bf16.mxu0 %v1464_v29  ;;  %1137 = vmatprep.subr.bf16.mxu1 %v1503_v20  ;;  %v1524_v29 = vld [vmem:[#allocation8 + $0xc4] ss:$8 sps:$4 sm:$0xff]  }
  0xb1   : > { %850 = vmatpush1.bf16.msra.mxu0 %v1466_v32  ;;  %1138 = vmatpush1.bf16.msra.mxu1 %v1505_v51  ;;  %v1529_v32 = vld [vmem:[#allocation8 + $0xb0] ss:$8 sps:$4 sm:$0xff]  }
  0xb2   : > { %851 = vmatprep.subr.bf16.mxu0 %v1467_v33  ;;  %1139 = vmatprep.subr.bf16.mxu1 %v1506_v53  ;;  %v1530_v33 = vld [vmem:[#allocation8 + $0xa4] ss:$8 sps:$4 sm:$0xff]  }
  0xb5   : > { %852 = vmatpush2.bf16.msra.mxu0 %v1469_v34  ;;  %1140 = vmatpush1.bf16.msra.mxu1 %v1508_v21  ;;  %v1532_v34 = vld [vmem:[#allocation8 + $0xa0] ss:$8 sps:$4 sm:$0xff]  }
  0xb6   : > { %853 = vmatprep.subr.bf16.mxu0 %v1470_v35  ;;  %1141 = vmatprep.subr.bf16.mxu1 %v1509_v52  ;;  %v1533_v35 = vld [vmem:[#allocation8 + $0x94] ss:$8 sps:$4 sm:$0xff]  }
  0xb9   : > { %854 = vmatpush2.bf16.msra.mxu0 %v1472_v36  ;;  %1142 = vmatpush1.bf16.msra.mxu1 %v1511_v54  ;;  %v1535_v36 = vld [vmem:[#allocation8 + $0x90] ss:$8 sps:$4 sm:$0xff]  }
  0xba   : > { %855 = vmatprep.subr.bf16.mxu0 %v1473_v37  ;;  %1143 = vmatprep.subr.bf16.mxu1 %v1512_v22  ;;  %v1536_v37 = vld [vmem:[#allocation8 + $0x84] ss:$8 sps:$4 sm:$0xff]  }
  0xbd   : > { %856 = vmatpush2.bf16.msra.mxu0 %v1475_v38  ;;  %1144 = vmatpush1.bf16.msra.mxu1 %v1514_v55  ;;  %v1538_v38 = vld [vmem:[#allocation8 + $0x80] ss:$8 sps:$4 sm:$0xff]  }
  0xbe   : > { %857 = vmatprep.subr.bf16.mxu0 %v1476_v39  ;;  %1145 = vmatprep.subr.bf16.mxu1 %v1515_v57 }
  0xc1   : > { %858 = vmatpush2.bf16.msra.mxu0 %v1478_v40  ;;  %1146 = vmatpush2.bf16.msra.mxu1 %v1517_v56 }
  0xc2   : > { %859 = vmatprep.subr.bf16.mxu0 %v1479_v41  ;;  %1147 = vmatprep.subr.bf16.mxu1 %v1518_v25 }
  0xc5   : > { %860 = vmatpush2.bf16.msra.mxu0 %v1481_v46  ;;  %1148 = vmatpush2.bf16.msra.mxu1 %v1520_v26  ;;  %v893_v46 = vld [vmem:[%s2090_s3] sm:$0x3] }
  0xc6   : > { %861 = vmatprep.subr.bf16.mxu0 %v1482_v47  ;;  %1149 = vmatprep.subr.bf16.mxu1 %v1521_v27  ;;  %v907_v47 = vld [vmem:[%s2091_s4] sm:$0x3] }
  0xc7   : > { %v916_v1 = vrot.slane %v907_v47, %v2030_v13 }
  0xc9   : > { %862 = vmatpush2.bf16.msra.mxu0 %v1484_v48  ;;  %1150 = vmatpush2.bf16.msra.mxu1 %v1523_v28  ;;  %v898_v48 = vrot.slane %v893_v46, %v2027_v12 }
  0xca   : > { %863 = vmatprep.subr.bf16.mxu0 %v1485_v49  ;;  %1151 = vmatprep.subr.bf16.mxu1 %v1524_v29  ;;  %v902_v49 = vrot.slane %v893_v46, %v2030_v13 }
  0xcd   : > { %864 = vmatpush2.bf16.msra.mxu0 %v1487_v50  ;;  %1152 = vmatpush2.bf16.msra.mxu1 %v1526_v30 }
  0xce   : > { %865 = vmatprep.subr.bf16.mxu0 %v1488_v0  ;;  %1153 = vmatprep.subr.bf16.mxu1 %v1527_v31  ;;  %v912_v0 = vrot.slane %v907_v47, %v2027_v12 }
  0xd1   : > { %866 = vmatpush2.bf16.msra.mxu0 %v1490_v18  ;;  %1154 = vmatpush2.bf16.msra.mxu1 %v1529_v32 }
  0xd2   : > { %1155 = vmatprep.subr.bf16.mxu1 %v1530_v33 }
  0xd4   : > { %868 = vmatmul.mubr.bf16.vlgmr.msra.gmra.mxu0 %v629_v11 }
  0xd5   : > { %1156 = vmatpush2.bf16.msra.mxu1 %v1532_v34 }
  0xd6   : > { %1157 = vmatprep.subr.bf16.mxu1 %v1533_v35 }
  0xd9   : > { %1158 = vmatpush2.bf16.msra.mxu1 %v1535_v36 }
  0xda   : > { %1159 = vmatprep.subr.bf16.mxu1 %v1536_v37 }
  0xdd   : > { %1160 = vmatpush2.bf16.msra.mxu1 %v1538_v38 }
 0x194   : > { %v869_v2 = vpop.f32.mrf.mxu0 }
 0x195   : > { %v870_v45 = vadd.f32 %v869_v2, %v668_v42 }
 0x196   : > { %v871_v44 = vpop.f32.mrf.mxu0 }
 0x197   : > { %v872_v4 = vadd.f32 %v871_v44, %v672_v43 }
 0x198   : > { %v873_v5 = vpop.f32.mrf.mxu0 }
 0x199   : > { %v876_v6 = vadd.f32 %v872_v4, %v870_v45  ;;  %v957_v5 = vld [vmem:[%s2093_s6] sm:$0x3] }
 0x19a   : > { %v874_v15 = vpop.f32.mrf.mxu0 }
 0x19b   : > { %877 = vadd.xlane.f32.xlu0 %v876_v6  ;;  %v962_v6 = vrot.slane %v957_v5, %v2027_v12  ;;  %v966_v15 = vrot.slane %v957_v5, %v2030_v13 }
 0x224   : > { %v878_v58 = vpop.xlane.xlu0 %877 }
 0x225   : > { %v880_v59 = vmul.f32 0.00390625, %v878_v58 }
 0x227   : > { %v881_v61 = vsub.f32 %v870_v45, %v880_v59  ;;  %v882_v23 = vsub.f32 %v872_v4, %v880_v59 }
 0x229   : > { %v883_v60 = vmul.f32 %v881_v61, %v881_v61  ;;  %v884_v62 = vmul.f32 %v882_v23, %v882_v23 }
 0x22b   : > { %v885_v24 = vadd.f32 %v884_v62, %v883_v60 }
 0x22d   : > { %886 = vadd.xlane.f32.xlu0 %v885_v24 }
 0x2b6   : > { %v887_v39 = vpop.xlane.xlu0 %886 }
 0x2b7   : > { %v888_v40 = vmul.f32 0.00390625, %v887_v39 }
 0x2b9   : > { %v889_v41 = vadd.f32 1e-05, %v888_v40 }
 0x2bb   : > { %1539 = vrsqrt.f32 %v889_v41 }
 0x2c8   : > { %v1540_v50 = vpop.eup %1539 }
 0x2c9   : > { %v892_v63 = vmul.f32 %v1540_v50, %v882_v23  ;;  %v891_v18 = vmul.f32 %v1540_v50, %v881_v61 }
 0x2cb   : > { %v906_v11 = vmul.f32 %v902_v49, %v892_v63  ;;  %v905_v14 = vmul.f32 %v898_v48, %v891_v18 }
 0x2cd   : > { %v920_v42 = vadd.f32 %v916_v1, %v906_v11  ;;  %v919_v43 = vadd.f32 %v912_v0, %v905_v14 }
 0x2cf   : > { %v922_v2 = vmax.f32 %v920_v42, 0.0  ;;  %v921_v44 = vmax.f32 %v919_v43, 0.0 }
 0x2d1   : > { %v924_v45 = vpack.c.bf16 %v922_v2, %v922_v2  ;;  %v923_v4 = vpack.c.bf16 %v921_v44, %v921_v44 }
 0x2d3   : > { %1161 = vmatprep.mubr.bf16.mxu1 %v924_v45 }
 0x2d4   : > { %1162 = vmatmul.mubr.bf16.vlgmr.msra.gmra.mxu1 %v923_v4 }
 0x394   : > { %v1163_v16 = vpop.f32.mrf.mxu1 }
 0x395   : > { %v1164_v17 = vadd.f32 %v1163_v16, %v962_v6 }
 0x396   : > { %v1165_v3 = vpop.f32.mrf.mxu1 }
 0x397   : > { %1170 = vst [vmem:[#allocation9] sm:$0xff] %v1164_v17  ;;  %v1166_v7 = vadd.f32 %v1165_v3, %v966_v15 }
 0x398   : > { %v1167_v8 = vpop.f32.mrf.mxu1 }
 0x399   : > { %1171 = vst [vmem:[#allocation9 + $0x8] sm:$0xff] %v1166_v7 }
 0x39a   : > { %v1168_v19 = vpop.f32.mrf.mxu1 }
 0x39b PF: > { %s2114_s23 = sadd.s32 4294967295, %s1675_s29   ;;  %s1687_s16 = smov [#allocation9]  }
 0x39c   : > { %p2054_p7 = scmp.eq.s32.totalorder %s2114_s23, 2  ;;  %s1182_s19 = sshll.u32 %s1687_s16, 4  ;;  %s1183_s19 = int_to_ptr.vmem [resolvable:$true] %s1182_s19 }
 0x39d   : > { %s1593_s21 = scalar_lea.vmem %s1183_s19, 256  ;;  %p1600_p1 = scmp.lt.s32.totalorder %s1183_s19, %s1183_s19 }
 0x39e   : > { %p1594_p9 = scmp.ne.s32.totalorder %s1183_s19, %s1593_s21  ;;  %p1601_p4 = scmp.lt.s32.totalorder %s1593_s21, %s1593_s21 }
 0x3a0   : > { %p1595_p11 = pnand %p1594_p9, %p2054_p7  ;;  %p1602_p2 = por %p1601_p4, %p1600_p1 }
 0x3a2   : > { %p1596_p0 = pneg %p1595_p11 }
 0x3a4   : > { %p1603_p6 = pnand %p1602_p2, %p1596_p0 }
 0x3a6   : > { %1606 = shalt.err (!%p1603_p6)
}
 0x3a7   : > { %1368 = dma.vmem_to_hbm [thread:$0]  (%p2054_p7), %s1183_s19, 256, %s2094_s7, [#allocation5]  }
 0x3a8   : > { %1650 = dma.done.wait (%p2054_p7), [#allocation5], 256  }
 0x3a9   : > { %1652 = vsyncadd (%p2054_p7), [#allocation5], 4294967040 }
 0x3aa PF: > { %s22_s29 = sadd.s32 1, %s1675_s29   ;;  %s2116_s27 = sld [smem:[#allocation15_spill]] }
 0x3ab   : > { %p19_p5 = scmp.ge.s32.totalorder %s22_s29, 5   ;;  %s2117_s28 = sld [smem:[#allocation16_spill]] }
 0x3ac   : > { %s2118_s24 = smov %s1659_s25  ;;  %s2119_s25 = smov %s1663_s26 }
 0x3ad   : > { %s2120_s26 = smov %s1786_s14  ;;  %21 = sbr.rel (!%p19_p5) target bundleno = 9 (0x9), region = 107 }
 0x3b2   :  { %1195 = vsyncpa [#allocation4], 1 }
 0x3b3   :  { %1197 = vsyncpa [#allocation4 + $0x1], 1 }
 0x3b4   :  { %1198 = vsyncpa [#allocation7], 1 }
 0x3b5   :  { %1199 = vsyncpa [#allocation5], 1 }
 0x3b6   :  { %1201 = vsyncpa [#allocation5 + $0x1], 1 }

// kernel: tpu_custom_call.1
= control target key start
LH: loop header
LB: loop body
LE: loop exit
PB: predicated region body
PF: predicated region fallthrough
CT: control target
= control target key end

     0   :  { %s2087_s0 = inlined_call_operand.hbm [shape: f32[6,40,256], index: 0, kind: input, shape index: {}]   ;;  %s2088_s1 = inlined_call_operand.hbm [shape: bf16[256,256], index: 1, kind: input, shape index: {}]   ;;  %s2089_s2 = inlined_call_operand.vmem [shape: f32[1,256], index: 2, kind: input, shape index: {}]   ;;  %s2090_s3 = inlined_call_operand.vmem [shape: f32[1,256], index: 3, kind: input, shape index: {}]   ;;  %s2091_s4 = inlined_call_operand.vmem [shape: f32[1,256], index: 4, kind: input, shape index: {}]   ;;  %s2092_s5 = inlined_call_operand.hbm [shape: bf16[256,256], index: 5, kind: input, shape index: {}]   ;;  %s2093_s6 = inlined_call_operand.vmem [shape: f32[1,256], index: 6, kind: input, shape index: {}]   ;;  %s2094_s7 = inlined_call_operand.hbm [shape: f32[8,256], index: 7, kind: output, shape index: {}]  }
   0x1   :  { %2101 = sst [smem:[#allocation17_spill]] %s2088_s1 }
   0x2   :  { %2102 = sst [smem:[#allocation18_spill]] %s2092_s5 }
   0x3   :  { %12 = vsyncpa [#allocation4], 0 }
   0x4   :  { %14 = vsyncpa [#allocation4 + $0x1], 0 }
   0x5   :  { %15 = vsyncpa [#allocation7], 0 }
   0x6   :  { %16 = vsyncpa [#allocation5], 0  ;;  %s1728_s24 = smov 0   ;;  %s1730_s25 = smov 0  }
   0x7   :  { %s1732_s26 = smov 0   ;;  %s1734_s27 = smov 0  }
   0x8   :  { %s1736_s28 = smov 0   ;;  %s1738_s29 = smov 0  }
   0x9 LB: > { %2103 = sst [smem:[#allocation15_spill]] %s1671_s28  ;;  %s2098_s30 = sadd.s32 4294967295, %s1675_s29   ;;  %s1675_s29 = sphi %s1738_s29, %s22_s29   ;;  %s1671_s28 = sphi %s1736_s28, %s2117_s28   ;;  %s1667_s27 = sphi %s1734_s27, %s2116_s27   ;;  %s1663_s26 = sphi %s1732_s26, %s2120_s26   ;;  %s1659_s25 = sphi %s1730_s25, %s2119_s25   ;;  %s1655_s24 = sphi %s1728_s24, %s2118_s24  }
   0xa   : > { %s31_s8 = sadd.s32 1, %s1671_s28  ;;  %s43_s9 = sadd.s32 1, %s1663_s26 }
   0xb   : > { %p32_p0 = scmp.ge.s32.totalorder %s31_s8, 3  ;;  %p50_p1 = scmp.ne.s32.totalorder %s1663_s26, %s1659_s25 }
   0xc   : > { %p51_p2 = scmp.eq.s32.totalorder %s1675_s29, 0  ;;  %p56_p4 = scmp.ne.s32.totalorder %s1659_s25, %s1655_s24 }
   0xd   : > { %s2122_s8 = smov (%p32_p0, %s31_s8), 0  ;;  %p1773_p5 = scmp.eq.s32.totalorder %s2098_s30, 0 }
   0xe   : > { %2104 = sst [smem:[#allocation16_spill]] %s2122_s8  ;;  %p1764_p3 = por %p51_p2, %p50_p1 }
   0xf   : > { %s39_s11 = ssub.s32 %s1671_s28, %s2122_s8  ;;  %p1266_p7 = scmp.ge.s32.totalorder %s1675_s29, 1 }
  0x10   : > { %s2106_s12 = scalar_select %p1773_p5, 1, 0 }
  0x11   : > { %p41_p6 = scmp.eq.s32.totalorder %s39_s11, 0  ;;  %p1780_p8 = por %p1773_p5, %p56_p4 }
  0x12   : > { %p219_p9 = scmp.lt.s32.totalorder %s1675_s29, 4  ;;  %s1677_s16 = smov [#allocation6]  }
  0x13   : > { %s2107_s13 = scalar_select %p1780_p8, 1, 0 }
  0x14   : > { %s1786_s14 = scalar_select %p41_p6, %s1663_s26, %s43_s9  }
  0x15   : > { %p1788_p10 = pnand %p1266_p7, %p219_p9  ;;  %s231_s17 = sshll.u32 %s1677_s16, 4  ;;  %s232_s17 = int_to_ptr.vmem [resolvable:$true] %s231_s17 }
  0x16   : > { %s1678_s19 = smov [#allocation8]   ;;  %s1552_s21 = scalar_lea.vmem %s232_s17, 4096 }
  0x17   : > { %p1371_p11 = pneg %p1788_p10  ;;  %s253_s20 = sshll.u32 %s1678_s19, 4  ;;  %s254_s20 = int_to_ptr.vmem [resolvable:$true] %s253_s20 }
  0x18   : > { %p1553_p0 = scmp.ne.s32.totalorder %s232_s17, %s1552_s21  ;;  %p1560_p4 = scmp.lt.s32.totalorder %s232_s17, %s232_s17 }
  0x19   : > { %p1796_p12 = pnand %p1371_p11, %p1773_p5  ;;  %p1561_p6 = scmp.lt.s32.totalorder %s1552_s21, %s1552_s21 }
  0x1b   : > { %p1543_p13 = pneg %p1796_p12  ;;  %p1562_p7 = por %p1561_p6, %p1560_p4 }
  0x1d   : > { %p1555_p1 = pnand %p1553_p0, %p1543_p13 }
  0x1f   : > { %p1556_p2 = pneg %p1555_p1 }
  0x21   : > { %p1563_p9 = pnand %p1562_p7, %p1556_p2 }
  0x23   : > { %1566 = shalt.err (!%p1563_p9)
}
  0x24   : > { %s1679_s22 = smov 128   ;;  %s1680_s23 = smov 8  }
  0x25   : > { %s2110_s1 = sld [smem:[#allocation17_spill]]  ;;  %s1578_s11 = scalar_lea.vmem %s254_s20, 4096 }
  0x26   : > { %p1579_p11 = scmp.ne.s32.totalorder %s254_s20, %s1578_s11  ;;  %p1586_p5 = scmp.lt.s32.totalorder %s254_s20, %s254_s20 }
  0x27   : > { %p1587_p8 = scmp.lt.s32.totalorder %s1578_s11, %s1578_s11 }
  0x28   : > { %p1581_p0 = pnand %p1579_p11, %p1543_p13 }
  0x29   : > { %p1588_p4 = por %p1587_p8, %p1586_p5 }
  0x2a   : > { %p1582_p1 = pneg %p1581_p0 }
  0x2b   : > { %1374 = dma.hbm_to_vmem [thread:$0]  (!%p1796_p12), %s2110_s1, 4096, %s232_s17, [#allocation7], %s1679_s22, %s1679_s22, %s1680_s23  }
  0x2c   : > { %p1589_p2 = pnand %p1588_p4, %p1582_p1 }
  0x2e   : > { %1592 = shalt.err (!%p1589_p2)
}
  0x2f   : > { %s2111_s5 = sld [smem:[#allocation18_spill]]  ;;  %p1269_p6 = scmp.ge.s32.totalorder %s1675_s29, 3 }
  0x31   : > { %266 = sbr.rel (%p1269_p6) target bundleno = 77 (0x4d), region = 40 }
  0x35   : > { %1377 = dma.hbm_to_vmem [thread:$0]  (!%p1796_p12), %s2111_s5, 4096, %s254_s20, [#allocation7], %s1679_s22, %s1679_s22, %s1680_s23  }
  0x36   : > { %269 = sbr.rel (!%p1764_p3) target bundleno = 77 (0x4d), region = 44 }
  0x3b   : > { %s270_s17 = sand.u32 1, %s1663_s26   ;;  %s1271_s21 = sshll.u32 %s1671_s28, 1 }
  0x3c   : > { %s1270_s24 = sshll.u32 %s270_s17, 8  ;;  %s279_s9 = ssub.s32 5, %s1271_s21 }
  0x3d   : > { %p280_p5 = scmp.lt.s32.totalorder %s279_s9, 2  ;;  %s271_s30 = scalar_lea.sflag [#allocation4], %s270_s17 }
  0x3e   : > { %s274_s1 = scalar_lea.vmem [#allocation3], %s1270_s24 }
  0x3f   : > { %s2124_s9 = smov (!%p280_p5, %s279_s9), 2 }
  0x40   : > { %s1272_s11 = smul.u32 1536, %s2124_s9 }
  0x42   : > { %s285_s18 = ssub.s32 4096, %s1272_s11 }
  0x43   : > { %286 = vsyncadd %s271_s30, %s285_s18  ;;  %p1273_p8 = scmp.ne.s32.totalorder %s1272_s11, 0  ;;  %s1357_s20 = sshll.u32 %s1671_s28, 9 }
  0x44   : > { %s292_s10 = scalar_lea.hbm %s2087_s0, %s1357_s20  ;;  %s299_s16 = sld [smem:[#allocation0]]  }
  0x45   : > { %s307_s19 = sshll.u32 %s274_s1, 4  ;;  %s1681_s5 = smov 1280   ;;  %s308_s19 = int_to_ptr.vmem [resolvable:$true] %s307_s19 }
  0x46   : > { %314 = sst [smem:[#allocation11]] %s1681_s5  ;;  %s1682_s21 = smov 512  }
  0x47   : > { %318 = sst [smem:[#allocation11 + $0x2]] %s2124_s9  ;;  %s1683_s8 = smov 256  }
  0x48   : > { %316 = sst [smem:[#allocation11 + $0x1]] %s1682_s21  ;;  %s1684_s18 = smov 16  }
  0x49   : > { %320 = sst [smem:[#allocation11 + $0x3]] %s1683_s8  ;;  %s1685_s28 = smov 131072  }
  0x4a   : > { %s1278_s17 = sshll.u32 %s299_s16, 26  ;;  %322 = sst [smem:[#allocation11 + $0x4]] %s1683_s8 }
  0x4b   : > { %s1279_s24 = sadd.s32 134217728, %s1278_s17  ;;  %324 = sst [smem:[#allocation11 + $0x5]] %s1684_s18 }
  0x4c   : > { %326 = dma.general (%p1273_p8), %s292_s10, %s1272_s11, %s308_s19, %s271_s30, %s1685_s28, [#allocation11], %s1279_s24, 0  }
  0x4d PF: > { %332 = sbr.rel (%p1788_p10) target bundleno = 938 (0x3aa), region = 48  ;;  %s334_s1 = sand.u32 (!%p1788_p10), 1, %s1659_s25  }
  0x4e   : > { %s1282_s5 = sshll.u32 (!%p1788_p10), %s334_s1, 8  ;;  %s335_s9 = scalar_lea.sflag (!%p1788_p10), [#allocation4], %s334_s1 }
  0x4f   : > { %s1831_s20 = scalar_lea.vmem (!%p1788_p10), [#allocation3], %s1282_s5  ;;  %p2112_p3 = scmp.ne.s32.totalorder (!%p1788_p10), %s2107_s13, 0 }
  0x52   : > { %1642 = dma.done.wait (%p2112_p3), %s335_s9, 4096  }
  0x53   : > { %1644 = vsyncadd (%p2112_p3), %s335_s9, 4294963200  ;;  %p2113_p12 = scmp.ne.s32.totalorder %s2106_s12, 0 }
  0x55   : > { %1646 = dma.done.wait (%p2113_p12), [#allocation7], 8192  }
  0x56   : > { %1648 = vsyncadd (%p2113_p12), [#allocation7], 4294959104  ;;  %p1285_p10 = scmp.ne.s32.totalorder %s1667_s27, 0 }
  0x58   : > { %384 = sbr.rel (%p1285_p10) target bundleno = 95 (0x5f), region = 64 }
  0x5d   : > { %v1686_v0 = vmov 0.0  }
  0x5e   : > { %385 = vst [vmem:[#allocation2] sm:$0xff] %v1686_v0  ;;  %386 = vst [vmem:[#allocation2 + $0x8] sm:$0xff] %v1686_v0 }
  0x5f PF: > { %v419_v1 = vlaneseq  ;;  %s1286_s28 = sshll.u32 %s1667_s27, 4  ;;  %v387_v4 = vld [vmem:[%s1831_s20] sm:$0xff]  ;;  %v388_v5 = vld [vmem:[%s1831_s20 + $0x8] sm:$0xff]  ;;  %v389_v9 = vld [vmem:[%s1831_s20 + $0x10] sm:$0xff]  ;;  %vm594_vm2 = vcmask 1041409   ;;  %vm596_vm3 = vcmask 1042434  }
  0x60   : > { %v423_v2 = vstv %s1286_s28  ;;  %v391_v6 = vld [vmem:[%s1831_s20 + $0x20] sm:$0xff]  ;;  %v390_v10 = vld [vmem:[%s1831_s20 + $0x18] sm:$0xff]  ;;  %v392_v11 = vld [vmem:[%s1831_s20 + $0x28] sm:$0xff]  ;;  %vm598_vm4 = vcmask 1043459   ;;  %vm600_vm5 = vcmask 1044484   ;;  %vm602_vm6 = vcmask 1045509  }
  0x61   : > { %v1843_v3 = vshrl.u32 %v419_v1, 7  ;;  %v393_v12 = vld [vmem:[%s1831_s20 + $0x30] sm:$0xff]  ;;  %v395_v13 = vld [vmem:[%s1831_s20 + $0x40] sm:$0xff]  ;;  %v394_v14 = vld [vmem:[%s1831_s20 + $0x38] sm:$0xff]  ;;  %vm604_vm7 = vcmask 1046534   ;;  %vm606_vm8 = vcmask 1047559  }
  0x62   : > { %v396_v15 = vld [vmem:[%s1831_s20 + $0x48] sm:$0xff]  ;;  %v397_v16 = vld [vmem:[%s1831_s20 + $0x50] sm:$0xff]  ;;  %v398_v17 = vld [vmem:[%s1831_s20 + $0x58] sm:$0xff]  ;;  %p1287_p13 = scmp.ne.s32.totalorder %s1667_s27, 2 }
  0x63   : > { %v421_v7 = vadd.s32 8, %v1843_v3  ;;  %v1850_v8 = vadd.s32 %v423_v2, %v1843_v3  ;;  %v399_v19 = vld [vmem:[%s1831_s20 + $0x60] sm:$0xff]  ;;  %v400_v20 = vld [vmem:[%s1831_s20 + $0x68] sm:$0xff]  ;;  %v401_v21 = vld [vmem:[%s1831_s20 + $0x70] sm:$0xff] }
  0x64   : > { %v402_v22 = vld [vmem:[%s1831_s20 + $0x78] sm:$0xff]  ;;  %v403_v23 = vld [vmem:[%s1831_s20 + $0x80] sm:$0xff]  ;;  %v404_v24 = vld [vmem:[%s1831_s20 + $0x88] sm:$0xff] }
  0x65   : > { %v1861_v18 = vadd.s32 %v423_v2, %v421_v7  ;;  %vm426_vm0 = vcmp.lt.s32.totalorder %v1850_v8, 40  ;;  %v405_v25 = vld [vmem:[%s1831_s20 + $0x90] sm:$0xff]  ;;  %v406_v26 = vld [vmem:[%s1831_s20 + $0x98] sm:$0xff]  ;;  %v407_v27 = vld [vmem:[%s1831_s20 + $0xa0] sm:$0xff] }
  0x66   : > { %v408_v28 = vld [vmem:[%s1831_s20 + $0xa8] sm:$0xff]  ;;  %v432_v29 = vsel %vm426_vm0, %v387_v4, 0.0  ;;  %v433_v30 = vsel %vm426_vm0, %v388_v5, 0.0  ;;  %v436_v31 = vsel %vm426_vm0, %v391_v6, 0.0  ;;  %v437_v32 = vsel %vm426_vm0, %v392_v11, 0.0  ;;  %v409_v33 = vld [vmem:[%s1831_s20 + $0xb0] sm:$0xff] }
  0x67   : > { %vm427_vm1 = vcmp.lt.s32.totalorder %v1861_v18, 40  ;;  %v410_v34 = vld [vmem:[%s1831_s20 + $0xb8] sm:$0xff]  ;;  %v440_v38 = vsel %vm426_vm0, %v395_v13, 0.0  ;;  %v411_v39 = vld [vmem:[%s1831_s20 + $0xc0] sm:$0xff]  ;;  %v412_v40 = vld [vmem:[%s1831_s20 + $0xc8] sm:$0xff]  ;;  %v441_v42 = vsel %vm426_vm0, %v396_v15, 0.0 }
  0x68   : > { %v434_v35 = vsel %vm427_vm1, %v389_v9, 0.0  ;;  %v435_v36 = vsel %vm427_vm1, %v390_v10, 0.0  ;;  %v438_v37 = vsel %vm427_vm1, %v393_v12, 0.0  ;;  %v439_v41 = vsel %vm427_vm1, %v394_v14, 0.0  ;;  %v413_v45 = vld [vmem:[%s1831_s20 + $0xd0] sm:$0xff]  ;;  %v414_v46 = vld [vmem:[%s1831_s20 + $0xd8] sm:$0xff] }
  0x69   : > { %v442_v43 = vsel %vm427_vm1, %v397_v16, 0.0  ;;  %v443_v44 = vsel %vm427_vm1, %v398_v17, 0.0  ;;  %v444_v47 = vsel %vm426_vm0, %v399_v19, 0.0  ;;  %v445_v48 = vsel %vm426_vm0, %v400_v20, 0.0 }
  0x6a   : > { %v446_v49 = vsel %vm427_vm1, %v401_v21, 0.0  ;;  %v447_v50 = vsel %vm427_vm1, %v402_v22, 0.0  ;;  %v1915_v51 = vsel %vm426_vm0, %v403_v23, 0.0  ;;  %v1919_v52 = vsel %vm426_vm0, %v404_v24, 0.0 }
  0x6b   : > { %v1923_v53 = vsel %vm427_vm1, %v405_v25, 0.0  ;;  %v1927_v54 = vsel %vm427_vm1, %v406_v26, 0.0  ;;  %v1931_v55 = vsel %vm426_vm0, %v407_v27, 0.0  ;;  %v1935_v56 = vsel %vm426_vm0, %v408_v28, 0.0 }
  0x6c   : > { %v1939_v57 = vsel %vm427_vm1, %v409_v33, 0.0  ;;  %v1943_v58 = vsel %vm427_vm1, %v410_v34, 0.0  ;;  %v1947_v59 = vsel %vm426_vm0, %v411_v39, 0.0  ;;  %v1951_v60 = vsel %vm426_vm0, %v412_v40, 0.0 }
  0x6d   : > { %v1955_v61 = vsel %vm427_vm1, %v413_v45, 0.0  ;;  %v1959_v62 = vsel %vm427_vm1, %v414_v46, 0.0  ;;  %v466_v63 = vadd.f32 %v434_v35, %v432_v29  ;;  %v473_v0 = vadd.f32 %v435_v36, %v433_v30  ;;  %v415_v30 = vld [vmem:[%s1831_s20 + $0xe0] sm:$0xff]  ;;  %v416_v35 = vld [vmem:[%s1831_s20 + $0xe8] sm:$0xff]  ;;  %v417_v36 = vld [vmem:[%s1831_s20 + $0xf0] sm:$0xff] }
  0x6e   : > { %v480_v1 = vadd.f32 %v438_v37, %v436_v31  ;;  %v487_v2 = vadd.f32 %v439_v41, %v437_v32  ;;  %v494_v4 = vadd.f32 %v442_v43, %v440_v38  ;;  %v501_v5 = vadd.f32 %v443_v44, %v441_v42  ;;  %v418_v37 = vld [vmem:[%s1831_s20 + $0xf8] sm:$0xff] }
  0x6f   : > { %v508_v6 = vadd.f32 %v446_v49, %v444_v47  ;;  %v515_v7 = vadd.f32 %v447_v50, %v445_v48  ;;  %v467_v9 = vrot.slane %v466_v63, 4  ;;  %v474_v10 = vrot.slane %v473_v0, 4 }
  0x70   : > { %v481_v11 = vrot.slane %v480_v1, 4  ;;  %v488_v12 = vrot.slane %v487_v2, 4  ;;  %v495_v13 = vrot.slane %v494_v4, 4  ;;  %v502_v14 = vrot.slane %v501_v5, 4 }
  0x71   : > { %v509_v15 = vrot.slane %v508_v6, 4  ;;  %v516_v16 = vrot.slane %v515_v7, 4  ;;  %v468_v17 = vadd.f32 %v467_v9, %v466_v63  ;;  %v475_v19 = vadd.f32 %v474_v10, %v473_v0 }
  0x72   : > { %v482_v20 = vadd.f32 %v481_v11, %v480_v1  ;;  %v489_v21 = vadd.f32 %v488_v12, %v487_v2  ;;  %v496_v22 = vadd.f32 %v495_v13, %v494_v4  ;;  %v503_v23 = vadd.f32 %v502_v14, %v501_v5 }
  0x73   : > { %v510_v24 = vadd.f32 %v509_v15, %v508_v6  ;;  %v517_v25 = vadd.f32 %v516_v16, %v515_v7  ;;  %v469_v26 = vrot.slane %v468_v17, 2  ;;  %v476_v27 = vrot.slane %v475_v19, 2 }
  0x74   : > { %v483_v28 = vrot.slane %v482_v20, 2  ;;  %v490_v29 = vrot.slane %v489_v21, 2  ;;  %v497_v31 = vrot.slane %v496_v22, 2  ;;  %v504_v32 = vrot.slane %v503_v23, 2 }
  0x75   : > { %v511_v33 = vrot.slane %v510_v24, 2  ;;  %v518_v34 = vrot.slane %v517_v25, 2  ;;  %v470_v38 = vadd.f32 %v469_v26, %v468_v17  ;;  %v477_v39 = vadd.f32 %v476_v27, %v475_v19 }
  0x76   : > { %v484_v40 = vadd.f32 %v483_v28, %v482_v20  ;;  %v491_v41 = vadd.f32 %v490_v29, %v489_v21  ;;  %v1965_v42 = vadd.f32 %v497_v31, %v496_v22  ;;  %v1967_v43 = vadd.f32 %v504_v32, %v503_v23 }
  0x77   : > { %v1969_v44 = vadd.f32 %v511_v33, %v510_v24  ;;  %v1971_v45 = vadd.f32 %v518_v34, %v517_v25  ;;  %v471_v46 = vrot.slane %v470_v38, 1  ;;  %v478_v47 = vrot.slane %v477_v39, 1 }
  0x78   : > { %v485_v48 = vrot.slane %v484_v40, 1  ;;  %v492_v49 = vrot.slane %v491_v41, 1  ;;  %v460_v50 = vsel %vm426_vm0, %v415_v30, 0.0  ;;  %v461_v63 = vsel %vm426_vm0, %v416_v35, 0.0 }
  0x79   : > { %v462_v0 = vsel %vm427_vm1, %v417_v36, 0.0  ;;  %v463_v1 = vsel %vm427_vm1, %v418_v37, 0.0  ;;  %v499_v2 = vrot.slane %v1965_v42, 1  ;;  %v506_v4 = vrot.slane %v1967_v43, 1 }
  0x7a   : > { %v513_v5 = vrot.slane %v1969_v44, 1  ;;  %v520_v6 = vrot.slane %v1971_v45, 1  ;;  %v1985_v7 = vadd.f32 %v471_v46, %v470_v38  ;;  %v1987_v9 = vadd.f32 %v478_v47, %v477_v39 }
  0x7b   : > { %v1989_v8 = vadd.f32 %v485_v48, %v484_v40  ;;  %v1991_v10 = vadd.f32 %v492_v49, %v491_v41  ;;  %v522_v18 = vadd.f32 %v1923_v53, %v1915_v51  ;;  %v529_v11 = vadd.f32 %v1927_v54, %v1919_v52 }
  0x7c   : > { %v536_v12 = vadd.f32 %v1939_v57, %v1931_v55  ;;  %v543_v13 = vadd.f32 %v1943_v58, %v1935_v56  ;;  %v550_v14 = vadd.f32 %v1955_v61, %v1947_v59  ;;  %v557_v15 = vadd.f32 %v1959_v62, %v1951_v60 }
  0x7d   : > { %v564_v16 = vadd.f32 %v462_v0, %v460_v50  ;;  %v571_v17 = vadd.f32 %v463_v1, %v461_v63  ;;  %v523_v19 = vrot.slane %v522_v18, 4  ;;  %v530_v20 = vrot.slane %v529_v11, 4 }
  0x7e   : > { %v537_v51 = vrot.slane %v536_v12, 4  ;;  %v544_v53 = vrot.slane %v543_v13, 4  ;;  %v551_v21 = vrot.slane %v550_v14, 4  ;;  %v558_v52 = vrot.slane %v557_v15, 4 }
  0x7f   : > { %v565_v54 = vrot.slane %v564_v16, 4  ;;  %v572_v22 = vrot.slane %v571_v17, 4  ;;  %v524_v55 = vadd.f32 %v523_v19, %v522_v18  ;;  %v531_v57 = vadd.f32 %v530_v20, %v529_v11  ;;  %v465_v19 = vld [vmem:[#allocation2 + $0x8] sm:$0xff] }
  0x80   : > { %v538_v56 = vadd.f32 %v537_v51, %v536_v12  ;;  %v545_v58 = vadd.f32 %v544_v53, %v543_v13  ;;  %v552_v59 = vadd.f32 %v551_v21, %v550_v14  ;;  %v559_v61 = vadd.f32 %v558_v52, %v557_v15 }
  0x81   : > { %v566_v23 = vadd.f32 %v565_v54, %v564_v16  ;;  %v573_v60 = vadd.f32 %v572_v22, %v571_v17  ;;  %v525_v62 = vrot.slane %v524_v55, 2  ;;  %v532_v24 = vrot.slane %v531_v57, 2 }
  0x82   : > { %v539_v25 = vrot.slane %v538_v56, 2  ;;  %v546_v26 = vrot.slane %v545_v58, 2  ;;  %v553_v27 = vrot.slane %v552_v59, 2  ;;  %v560_v28 = vrot.slane %v559_v61, 2 }
  0x83   : > { %v567_v29 = vrot.slane %v566_v23, 2  ;;  %v574_v30 = vrot.slane %v573_v60, 2  ;;  %v526_v31 = vadd.f32 %v525_v62, %v524_v55  ;;  %v533_v32 = vadd.f32 %v532_v24, %v531_v57 }
  0x84   : > { %v540_v33 = vadd.f32 %v539_v25, %v538_v56  ;;  %v547_v34 = vadd.f32 %v546_v26, %v545_v58  ;;  %v554_v35 = vadd.f32 %v553_v27, %v552_v59  ;;  %v561_v36 = vadd.f32 %v560_v28, %v559_v61 }
  0x85   : > { %v568_v37 = vadd.f32 %v567_v29, %v566_v23  ;;  %v575_v38 = vadd.f32 %v574_v30, %v573_v60  ;;  %v527_v39 = vrot.slane %v526_v31, 1  ;;  %v534_v40 = vrot.slane %v533_v32, 1 }
  0x86   : > { %v541_v41 = vrot.slane %v540_v33, 1  ;;  %v548_v46 = vrot.slane %v547_v34, 1  ;;  %v500_v47 = vadd.f32 %v499_v2, %v1965_v42  ;;  %v507_v48 = vadd.f32 %v506_v4, %v1967_v43 }
  0x87   : > { %v555_v49 = vrot.slane %v554_v35, 1  ;;  %v562_v50 = vrot.slane %v561_v36, 1  ;;  %v514_v63 = vadd.f32 %v513_v5, %v1969_v44  ;;  %v521_v0 = vadd.f32 %v520_v6, %v1971_v45 }
  0x88   : > { %v569_v1 = vrot.slane %v568_v37, 1  ;;  %v576_v18 = vrot.slane %v575_v38, 1  ;;  %v528_v11 = vadd.f32 %v527_v39, %v526_v31  ;;  %v535_v12 = vadd.f32 %v534_v40, %v533_v32 }
  0x89   : > { %v542_v13 = vadd.f32 %v541_v41, %v540_v33  ;;  %v549_v14 = vadd.f32 %v548_v46, %v547_v34  ;;  %v595_v42 = vsel %vm594_vm2, %v1989_v8, %v1985_v7  ;;  %v608_v43 = vsel %vm594_vm2, %v1991_v10, %v1987_v9  ;;  %v464_v8 = vld [vmem:[#allocation2] sm:$0xff] }
  0x8a   : > { %v556_v2 = vadd.f32 %v555_v49, %v554_v35  ;;  %v563_v44 = vadd.f32 %v562_v50, %v561_v36  ;;  %v597_v45 = vsel %vm596_vm3, %v500_v47, %v595_v42  ;;  %v609_v4 = vsel %vm596_vm3, %v507_v48, %v608_v43 }
  0x8b   : > { %v570_v5 = vadd.f32 %v569_v1, %v568_v37  ;;  %v577_v6 = vadd.f32 %v576_v18, %v575_v38  ;;  %v599_v15 = vsel %vm598_vm4, %v514_v63, %v597_v45  ;;  %v610_v16 = vsel %vm598_vm4, %v521_v0, %v609_v4 }
  0x8c   : > { %v601_v17 = vsel %vm600_vm5, %v528_v11, %v599_v15  ;;  %v611_v7 = vsel %vm600_vm5, %v535_v12, %v610_v16 }
  0x8d   : > { %v603_v9 = vsel %vm602_vm6, %v542_v13, %v601_v17  ;;  %v612_v10 = vsel %vm602_vm6, %v549_v14, %v611_v7 }
  0x8e   : > { %v605_v20 = vsel %vm604_vm7, %v556_v2, %v603_v9  ;;  %v613_v51 = vsel %vm604_vm7, %v563_v44, %v612_v10  ;;  %624 = sbr.rel (%p1287_p13) target bundleno = 923 (0x39b), region = 68 }
  0x8f   : > { %v607_v53 = vsel %vm606_vm8, %v570_v5, %v605_v20  ;;  %v614_v21 = vsel %vm606_vm8, %v577_v6, %v613_v51 }
  0x90   : > { %v617_v52 = vadd.f32 %v607_v53, %v464_v8  ;;  %v618_v54 = vadd.f32 %v614_v21, %v465_v19 }
  0x92   : > { %619 = vst [vmem:[#allocation2] sm:$0xff] %v617_v52  ;;  %620 = vst [vmem:[#allocation2 + $0x8] sm:$0xff] %v618_v54 }
  0x93   : > { %v1443_v22 = vld [vmem:[#allocation6 + $0x74] ss:$8 sps:$4 sm:$0xff]   ;;  %v1445_v55 = vld [vmem:[#allocation6 + $0x70] ss:$8 sps:$4 sm:$0xff]   ;;  %v1446_v57 = vld [vmem:[#allocation6 + $0x64] ss:$8 sps:$4 sm:$0xff]  }
  0x94   : > { %835 = vmatprep.subr.bf16.mxu0 %v1443_v22  ;;  %v1448_v56 = vld [vmem:[#allocation6 + $0x60] ss:$8 sps:$4 sm:$0xff]   ;;  %v1449_v58 = vld [vmem:[#allocation6 + $0x54] ss:$8 sps:$4 sm:$0xff]   ;;  %v1451_v59 = vld [vmem:[#allocation6 + $0x50] ss:$8 sps:$4 sm:$0xff]  }
  0x95   : > { %836 = vmatpush1.bf16.msra.mxu0 %v1445_v55  ;;  %v1452_v61 = vld [vmem:[#allocation6 + $0x44] ss:$8 sps:$4 sm:$0xff]   ;;  %v1454_v23 = vld [vmem:[#allocation6 + $0x40] ss:$8 sps:$4 sm:$0xff]   ;;  %v1455_v60 = vld [vmem:[#allocation6 + $0x34] ss:$8 sps:$4 sm:$0xff]  }
  0x96   : > { %837 = vmatprep.subr.bf16.mxu0 %v1446_v57  ;;  %v1457_v62 = vld [vmem:[#allocation6 + $0x30] ss:$8 sps:$4 sm:$0xff]   ;;  %v1458_v24 = vld [vmem:[#allocation6 + $0x24] ss:$8 sps:$4 sm:$0xff]   ;;  %v1460_v25 = vld [vmem:[#allocation6 + $0x20] ss:$8 sps:$4 sm:$0xff]  }
  0x97   : > { %v1461_v26 = vld [vmem:[#allocation6 + $0x14] ss:$8 sps:$4 sm:$0xff]   ;;  %v1463_v28 = vld [vmem:[#allocation6 + $0x10] ss:$8 sps:$4 sm:$0xff]   ;;  %v1464_v29 = vld [vmem:[#allocation6 + $0x4] ss:$8 sps:$4 sm:$0xff]  }
  0x98   : > { %v1466_v32 = vld [vmem:[#allocation6] ss:$8 sps:$4 sm:$0xff]   ;;  %v1467_v33 = vld [vmem:[#allocation6 + $0xf4] ss:$8 sps:$4 sm:$0xff]   ;;  %v1469_v34 = vld [vmem:[#allocation6 + $0xf0] ss:$8 sps:$4 sm:$0xff]  }
  0x99   : > { %838 = vmatpush1.bf16.msra.mxu0 %v1448_v56  ;;  %v626_v27 = vld [vmem:[#allocation2 + $0x8] sm:$0xff]  ;;  %v1470_v35 = vld [vmem:[#allocation6 + $0xe4] ss:$8 sps:$4 sm:$0xff]   ;;  %v1472_v36 = vld [vmem:[#allocation6 + $0xe0] ss:$8 sps:$4 sm:$0xff]   ;;  %v2027_v12 = vsub.s32 0, %v1843_v3 }
  0x9a   : > { %839 = vmatprep.subr.bf16.mxu0 %v1449_v58  ;;  %v628_v30 = vmul.f32 0.025, %v626_v27  ;;  %v1473_v37 = vld [vmem:[#allocation6 + $0xd4] ss:$8 sps:$4 sm:$0xff]   ;;  %v1475_v38 = vld [vmem:[#allocation6 + $0xd0] ss:$8 sps:$4 sm:$0xff]  }
  0x9b   : > { %v1476_v39 = vld [vmem:[#allocation6 + $0xc4] ss:$8 sps:$4 sm:$0xff]   ;;  %v1478_v40 = vld [vmem:[#allocation6 + $0xc0] ss:$8 sps:$4 sm:$0xff]   ;;  %v1479_v41 = vld [vmem:[#allocation6 + $0xb4] ss:$8 sps:$4 sm:$0xff]  }
  0x9c   : > { %v630_v31 = vpack.c.bf16 %v628_v30, %v628_v30  ;;  %v1481_v46 = vld [vmem:[#allocation6 + $0xb0] ss:$8 sps:$4 sm:$0xff]   ;;  %v1482_v47 = vld [vmem:[#allocation6 + $0xa4] ss:$8 sps:$4 sm:$0xff]   ;;  %v1484_v48 = vld [vmem:[#allocation6 + $0xa0] ss:$8 sps:$4 sm:$0xff]  }
  0x9d   : > { %840 = vmatpush1.bf16.msra.mxu0 %v1451_v59  ;;  %v1485_v49 = vld [vmem:[#allocation6 + $0x94] ss:$8 sps:$4 sm:$0xff]   ;;  %v1487_v50 = vld [vmem:[#allocation6 + $0x90] ss:$8 sps:$4 sm:$0xff]   ;;  %v1488_v0 = vld [vmem:[#allocation6 + $0x84] ss:$8 sps:$4 sm:$0xff]  }
  0x9e   : > { %841 = vmatprep.subr.bf16.mxu0 %v1452_v61  ;;  %867 = vmatprep.mubr.bf16.mxu0 %v630_v31  ;;  %v625_v63 = vld [vmem:[#allocation2] sm:$0xff]  ;;  %v1490_v18 = vld [vmem:[#allocation6 + $0x80] ss:$8 sps:$4 sm:$0xff]   ;;  %v2030_v13 = vsub.s32 1, %v1843_v3  ;;  %v1494_v3 = vld [vmem:[#allocation8 + $0x64] ss:$8 sps:$4 sm:$0xff]  }
  0x9f   : > { %v627_v1 = vmul.f32 0.025, %v625_v63  ;;  %v663_v14 = vld [vmem:[%s2089_s2] sm:$0x3]  ;;  %v1491_v16 = vld [vmem:[#allocation8 + $0x74] ss:$8 sps:$4 sm:$0xff]  }
  0xa0   : > { %v668_v42 = vrot.slane %v663_v14, %v2027_v12  ;;  %v672_v43 = vrot.slane %v663_v14, %v2030_v13  ;;  %v1493_v17 = vld [vmem:[#allocation8 + $0x70] ss:$8 sps:$4 sm:$0xff]   ;;  %1129 = vmatprep.subr.bf16.mxu1 %v1491_v16  ;;  %v1496_v7 = vld [vmem:[#allocation8 + $0x60] ss:$8 sps:$4 sm:$0xff]   ;;  %v1497_v8 = vld [vmem:[#allocation8 + $0x54] ss:$8 sps:$4 sm:$0xff]  }
  0xa1   : > { %842 = vmatpush1.bf16.msra.mxu0 %v1454_v23  ;;  %v629_v11 = vpack.c.bf16 %v627_v1, %v627_v1  ;;  %1130 = vmatpush1.bf16.msra.mxu1 %v1493_v17  ;;  %v1499_v19 = vld [vmem:[#allocation8 + $0x50] ss:$8 sps:$4 sm:$0xff]   ;;  %v1500_v9 = vld [vmem:[#allocation8 + $0x44] ss:$8 sps:$4 sm:$0xff]   ;;  %v1502_v10 = vld [vmem:[#allocation8 + $0x40] ss:$8 sps:$4 sm:$0xff]  }
  0xa2   : > { %843 = vmatprep.subr.bf16.mxu0 %v1455_v60  ;;  %1131 = vmatprep.subr.bf16.mxu1 %v1494_v3  ;;  %v1503_v20 = vld [vmem:[#allocation8 + $0x34] ss:$8 sps:$4 sm:$0xff]   ;;  %v1505_v51 = vld [vmem:[#allocation8 + $0x30] ss:$8 sps:$4 sm:$0xff]   ;;  %v1506_v53 = vld [vmem:[#allocation8 + $0x24] ss:$8 sps:$4 sm:$0xff]  }
  0xa3   : > { %v1508_v21 = vld [vmem:[#allocation8 + $0x20] ss:$8 sps:$4 sm:$0xff]   ;;  %v1509_v52 = vld [vmem:[#allocation8 + $0x14] ss:$8 sps:$4 sm:$0xff]   ;;  %v1511_v54 = vld [vmem:[#allocation8 + $0x10] ss:$8 sps:$4 sm:$0xff]  }
  0xa4   : > { %v1512_v22 = vld [vmem:[#allocation8 + $0x4] ss:$8 sps:$4 sm:$0xff]   ;;  %v1514_v55 = vld [vmem:[#allocation8] ss:$8 sps:$4 sm:$0xff]   ;;  %v1515_v57 = vld [vmem:[#allocation8 + $0xf4] ss:$8 sps:$4 sm:$0xff]  }
  0xa5   : > { %844 = vmatpush1.bf16.msra.mxu0 %v1457_v62  ;;  %1132 = vmatpush1.bf16.msra.mxu1 %v1496_v7  ;;  %v1517_v56 = vld [vmem:[#allocation8 + $0xf0] ss:$8 sps:$4 sm:$0xff]   ;;  %v1521_v27 = vld [vmem:[#allocation8 + $0xd4] ss:$8 sps:$4 sm:$0xff]   ;;  %v1526_v30 = vld [vmem:[#allocation8 + $0xc0] ss:$8 sps:$4 sm:$0xff]  }
  0xa6   : > { %845 = vmatprep.subr.bf16.mxu0 %v1458_v24  ;;  %1133 = vmatprep.subr.bf16.mxu1 %v1497_v8  ;;  %v1527_v31 = vld [vmem:[#allocation8 + $0xb4] ss:$8 sps:$4 sm:$0xff]  }
  0xa9   : > { %846 = vmatpush1.bf16.msra.mxu0 %v1460_v25  ;;  %1134 = vmatpush1.bf16.msra.mxu1 %v1499_v19  ;;  %v1518_v25 = vld [vmem:[#allocation8 + $0xe4] ss:$8 sps:$4 sm:$0xff]  }
  0xaa   : > { %847 = vmatprep.subr.bf16.mxu0 %v1461_v26  ;;  %1135 = vmatprep.subr.bf16.mxu1 %v1500_v9  ;;  %v1520_v26 = vld [vmem:[#allocation8 + $0xe0] ss:$8 sps:$4 sm:$0xff]  }
  0xad   : > { %848 = vmatpush1.bf16.msra.mxu0 %v1463_v28  ;;  %1136 = vmatpush1.bf16.msra.mxu1 %v1502_v10  ;;  %v1523_v28 = vld [vmem:[#allocation8 + $0xd0] ss:$8 sps:$4 sm:$0xff]  }
  0xae   : > { %849 = vmatprep.subr.bf16.mxu0 %v1464_v29  ;;  %1137 = vmatprep.subr.bf16.mxu1 %v1503_v20  ;;  %v1524_v29 = vld [vmem:[#allocation8 + $0xc4] ss:$8 sps:$4 sm:$0xff]  }
  0xb1   : > { %850 = vmatpush1.bf16.msra.mxu0 %v1466_v32  ;;  %1138 = vmatpush1.bf16.msra.mxu1 %v1505_v51  ;;  %v1529_v32 = vld [vmem:[#allocation8 + $0xb0] ss:$8 sps:$4 sm:$0xff]  }
  0xb2   : > { %851 = vmatprep.subr.bf16.mxu0 %v1467_v33  ;;  %1139 = vmatprep.subr.bf16.mxu1 %v1506_v53  ;;  %v1530_v33 = vld [vmem:[#allocation8 + $0xa4] ss:$8 sps:$4 sm:$0xff]  }
  0xb5   : > { %852 = vmatpush2.bf16.msra.mxu0 %v1469_v34  ;;  %1140 = vmatpush1.bf16.msra.mxu1 %v1508_v21  ;;  %v1532_v34 = vld [vmem:[#allocation8 + $0xa0] ss:$8 sps:$4 sm:$0xff]  }
  0xb6   : > { %853 = vmatprep.subr.bf16.mxu0 %v1470_v35  ;;  %1141 = vmatprep.subr.bf16.mxu1 %v1509_v52  ;;  %v1533_v35 = vld [vmem:[#allocation8 + $0x94] ss:$8 sps:$4 sm:$0xff]  }
  0xb9   : > { %854 = vmatpush2.bf16.msra.mxu0 %v1472_v36  ;;  %1142 = vmatpush1.bf16.msra.mxu1 %v1511_v54  ;;  %v1535_v36 = vld [vmem:[#allocation8 + $0x90] ss:$8 sps:$4 sm:$0xff]  }
  0xba   : > { %855 = vmatprep.subr.bf16.mxu0 %v1473_v37  ;;  %1143 = vmatprep.subr.bf16.mxu1 %v1512_v22  ;;  %v1536_v37 = vld [vmem:[#allocation8 + $0x84] ss:$8 sps:$4 sm:$0xff]  }
  0xbd   : > { %856 = vmatpush2.bf16.msra.mxu0 %v1475_v38  ;;  %1144 = vmatpush1.bf16.msra.mxu1 %v1514_v55  ;;  %v1538_v38 = vld [vmem:[#allocation8 + $0x80] ss:$8 sps:$4 sm:$0xff]  }
  0xbe   : > { %857 = vmatprep.subr.bf16.mxu0 %v1476_v39  ;;  %1145 = vmatprep.subr.bf16.mxu1 %v1515_v57 }
  0xc1   : > { %858 = vmatpush2.bf16.msra.mxu0 %v1478_v40  ;;  %1146 = vmatpush2.bf16.msra.mxu1 %v1517_v56 }
  0xc2   : > { %859 = vmatprep.subr.bf16.mxu0 %v1479_v41  ;;  %1147 = vmatprep.subr.bf16.mxu1 %v1518_v25 }
  0xc5   : > { %860 = vmatpush2.bf16.msra.mxu0 %v1481_v46  ;;  %1148 = vmatpush2.bf16.msra.mxu1 %v1520_v26  ;;  %v893_v46 = vld [vmem:[%s2090_s3] sm:$0x3] }
  0xc6   : > { %861 = vmatprep.subr.bf16.mxu0 %v1482_v47  ;;  %1149 = vmatprep.subr.bf16.mxu1 %v1521_v27  ;;  %v907_v47 = vld [vmem:[%s2091_s4] sm:$0x3] }
  0xc7   : > { %v916_v1 = vrot.slane %v907_v47, %v2030_v13 }
  0xc9   : > { %862 = vmatpush2.bf16.msra.mxu0 %v1484_v48  ;;  %1150 = vmatpush2.bf16.msra.mxu1 %v1523_v28  ;;  %v898_v48 = vrot.slane %v893_v46, %v2027_v12 }
  0xca   : > { %863 = vmatprep.subr.bf16.mxu0 %v1485_v49  ;;  %1151 = vmatprep.subr.bf16.mxu1 %v1524_v29  ;;  %v902_v49 = vrot.slane %v893_v46, %v2030_v13 }
  0xcd   : > { %864 = vmatpush2.bf16.msra.mxu0 %v1487_v50  ;;  %1152 = vmatpush2.bf16.msra.mxu1 %v1526_v30 }
  0xce   : > { %865 = vmatprep.subr.bf16.mxu0 %v1488_v0  ;;  %1153 = vmatprep.subr.bf16.mxu1 %v1527_v31  ;;  %v912_v0 = vrot.slane %v907_v47, %v2027_v12 }
  0xd1   : > { %866 = vmatpush2.bf16.msra.mxu0 %v1490_v18  ;;  %1154 = vmatpush2.bf16.msra.mxu1 %v1529_v32 }
  0xd2   : > { %1155 = vmatprep.subr.bf16.mxu1 %v1530_v33 }
  0xd4   : > { %868 = vmatmul.mubr.bf16.vlgmr.msra.gmra.mxu0 %v629_v11 }
  0xd5   : > { %1156 = vmatpush2.bf16.msra.mxu1 %v1532_v34 }
  0xd6   : > { %1157 = vmatprep.subr.bf16.mxu1 %v1533_v35 }
  0xd9   : > { %1158 = vmatpush2.bf16.msra.mxu1 %v1535_v36 }
  0xda   : > { %1159 = vmatprep.subr.bf16.mxu1 %v1536_v37 }
  0xdd   : > { %1160 = vmatpush2.bf16.msra.mxu1 %v1538_v38 }
 0x194   : > { %v869_v2 = vpop.f32.mrf.mxu0 }
 0x195   : > { %v870_v45 = vadd.f32 %v869_v2, %v668_v42 }
 0x196   : > { %v871_v44 = vpop.f32.mrf.mxu0 }
 0x197   : > { %v872_v4 = vadd.f32 %v871_v44, %v672_v43 }
 0x198   : > { %v873_v5 = vpop.f32.mrf.mxu0 }
 0x199   : > { %v876_v6 = vadd.f32 %v872_v4, %v870_v45  ;;  %v957_v5 = vld [vmem:[%s2093_s6] sm:$0x3] }
 0x19a   : > { %v874_v15 = vpop.f32.mrf.mxu0 }
 0x19b   : > { %877 = vadd.xlane.f32.xlu0 %v876_v6  ;;  %v962_v6 = vrot.slane %v957_v5, %v2027_v12  ;;  %v966_v15 = vrot.slane %v957_v5, %v2030_v13 }
 0x224   : > { %v878_v58 = vpop.xlane.xlu0 %877 }
 0x225   : > { %v880_v59 = vmul.f32 0.00390625, %v878_v58 }
 0x227   : > { %v881_v61 = vsub.f32 %v870_v45, %v880_v59  ;;  %v882_v23 = vsub.f32 %v872_v4, %v880_v59 }
 0x229   : > { %v883_v60 = vmul.f32 %v881_v61, %v881_v61  ;;  %v884_v62 = vmul.f32 %v882_v23, %v882_v23 }
 0x22b   : > { %v885_v24 = vadd.f32 %v884_v62, %v883_v60 }
 0x22d   : > { %886 = vadd.xlane.f32.xlu0 %v885_v24 }
 0x2b6   : > { %v887_v39 = vpop.xlane.xlu0 %886 }
 0x2b7   : > { %v888_v40 = vmul.f32 0.00390625, %v887_v39 }
 0x2b9   : > { %v889_v41 = vadd.f32 1e-05, %v888_v40 }
 0x2bb   : > { %1539 = vrsqrt.f32 %v889_v41 }
 0x2c8   : > { %v1540_v50 = vpop.eup %1539 }
 0x2c9   : > { %v892_v63 = vmul.f32 %v1540_v50, %v882_v23  ;;  %v891_v18 = vmul.f32 %v1540_v50, %v881_v61 }
 0x2cb   : > { %v906_v11 = vmul.f32 %v902_v49, %v892_v63  ;;  %v905_v14 = vmul.f32 %v898_v48, %v891_v18 }
 0x2cd   : > { %v920_v42 = vadd.f32 %v916_v1, %v906_v11  ;;  %v919_v43 = vadd.f32 %v912_v0, %v905_v14 }
 0x2cf   : > { %v922_v2 = vmax.f32 %v920_v42, 0.0  ;;  %v921_v44 = vmax.f32 %v919_v43, 0.0 }
 0x2d1   : > { %v924_v45 = vpack.c.bf16 %v922_v2, %v922_v2  ;;  %v923_v4 = vpack.c.bf16 %v921_v44, %v921_v44 }
 0x2d3   : > { %1161 = vmatprep.mubr.bf16.mxu1 %v924_v45 }
 0x2d4   : > { %1162 = vmatmul.mubr.bf16.vlgmr.msra.gmra.mxu1 %v923_v4 }
 0x394   : > { %v1163_v16 = vpop.f32.mrf.mxu1 }
 0x395   : > { %v1164_v17 = vadd.f32 %v1163_v16, %v962_v6 }
 0x396   : > { %v1165_v3 = vpop.f32.mrf.mxu1 }
 0x397   : > { %1170 = vst [vmem:[#allocation9] sm:$0xff] %v1164_v17  ;;  %v1166_v7 = vadd.f32 %v1165_v3, %v966_v15 }
 0x398   : > { %v1167_v8 = vpop.f32.mrf.mxu1 }
 0x399   : > { %1171 = vst [vmem:[#allocation9 + $0x8] sm:$0xff] %v1166_v7 }
 0x39a   : > { %v1168_v19 = vpop.f32.mrf.mxu1 }
 0x39b PF: > { %s2114_s23 = sadd.s32 4294967295, %s1675_s29   ;;  %s1687_s16 = smov [#allocation9]  }
 0x39c   : > { %p2054_p7 = scmp.eq.s32.totalorder %s2114_s23, 2  ;;  %s1182_s19 = sshll.u32 %s1687_s16, 4  ;;  %s1183_s19 = int_to_ptr.vmem [resolvable:$true] %s1182_s19 }
 0x39d   : > { %s1593_s21 = scalar_lea.vmem %s1183_s19, 256  ;;  %p1600_p1 = scmp.lt.s32.totalorder %s1183_s19, %s1183_s19 }
 0x39e   : > { %p1594_p9 = scmp.ne.s32.totalorder %s1183_s19, %s1593_s21  ;;  %p1601_p4 = scmp.lt.s32.totalorder %s1593_s21, %s1593_s21 }
 0x3a0   : > { %p1595_p11 = pnand %p1594_p9, %p2054_p7  ;;  %p1602_p2 = por %p1601_p4, %p1600_p1 }
 0x3a2   : > { %p1596_p0 = pneg %p1595_p11 }
 0x3a4   : > { %p1603_p6 = pnand %p1602_p2, %p1596_p0 }
 0x3a6   : > { %1606 = shalt.err (!%p1603_p6)
}
 0x3a7   : > { %1368 = dma.vmem_to_hbm [thread:$0]  (%p2054_p7), %s1183_s19, 256, %s2094_s7, [#allocation5]  }
 0x3a8   : > { %1650 = dma.done.wait (%p2054_p7), [#allocation5], 256  }
 0x3a9   : > { %1652 = vsyncadd (%p2054_p7), [#allocation5], 4294967040 }
 0x3aa PF: > { %s22_s29 = sadd.s32 1, %s1675_s29   ;;  %s2116_s27 = sld [smem:[#allocation15_spill]] }
 0x3ab   : > { %p19_p5 = scmp.ge.s32.totalorder %s22_s29, 5   ;;  %s2117_s28 = sld [smem:[#allocation16_spill]] }
 0x3ac   : > { %s2118_s24 = smov %s1659_s25  ;;  %s2119_s25 = smov %s1663_s26 }
 0x3ad   : > { %s2120_s26 = smov %s1786_s14  ;;  %21 = sbr.rel (!%p19_p5) target bundleno = 9 (0x9), region = 107 }
 0x3b2   :  { %1195 = vsyncpa [#allocation4], 1 }
 0x3b3   :  { %1197 = vsyncpa [#allocation4 + $0x1], 1 }
 0x3b4   :  { %1198 = vsyncpa [#allocation7], 1 }
 0x3b5   :  { %1199 = vsyncpa [#allocation5], 1 }
 0x3b6   :  { %1201 = vsyncpa [#allocation5 + $0x1], 1 }

</bundles_post_ra>
